<compile_context>
chip_gen: v7x
topology: tpu7x:2x2x1
jax: 0.10.0
libtpu: 0.0.40
codegen_flags: <defaults>
</compile_context>

<pallas_src>
import jax
import jax.numpy as jnp
from jax.experimental import pallas as pl
from jax.experimental.pallas import tpu as pltpu


def lstm_kernel(x_ref, win_ref, wrec_ref, wfc_ref, out_ref):
    B = out_ref.shape[0]
    H = wrec_ref.shape[0] // 3
    In = x_ref.shape[1]
    T = x_ref.shape[0] // B
    H4 = 4 * H

    # Unpack the packed weight slabs (static slices -> plain VMEM loads).
    wih0 = win_ref[0:In, :]            # (In, 4H)  i/f/o columns pre-scaled by 0.5
    b0 = win_ref[In:In + 1, :]         # (1, 4H)
    b1 = win_ref[In + 1:In + 2, :]     # (1, 4H)
    whh0 = wrec_ref[0:H, :]            # (H, 4H)
    wih1 = wrec_ref[H:2 * H, :]        # (H, 4H)
    whh1 = wrec_ref[2 * H:3 * H, :]    # (H, 4H)
    wfc = wfc_ref[0:H, :]              # (H, O)
    bfc = wfc_ref[H:H + 1, :]          # (1, O)

    # Lane-constant post-tanh affine: sigmoid lanes (i,f,o) -> 0.5*t + 0.5,
    # tanh lane group (g) -> 1*t + 0.  Computed once, reused every step.
    lane = jax.lax.broadcasted_iota(jnp.int32, (1, H4), 1)
    is_g = jnp.logical_and(lane >= 2 * H, lane < 3 * H)
    act_mul = jnp.where(is_g, 1.0, 0.5).astype(jnp.float32)
    act_add = jnp.where(is_g, 0.0, 0.5).astype(jnp.float32)

    # Hoisted, recurrence-free layer-0 input projection for ALL timesteps:
    # one (T*B, In) @ (In, 4H) matmul with the layer-0 bias folded in.
    xg0 = jnp.dot(x_ref[...], wih0, preferred_element_type=jnp.float32) + b0

    def cell(gates, c):
        # One EUP tanh covers all four gates (PyTorch order i, f, g, o).
        a = act_mul * jnp.tanh(gates) + act_add
        i = a[:, 0 * H:1 * H]
        f = a[:, 1 * H:2 * H]
        g = a[:, 2 * H:3 * H]
        o = a[:, 3 * H:4 * H]
        c_new = f * c + i * g
        h_new = o * jnp.tanh(c_new)
        return h_new, c_new

    zeros = jnp.zeros((B, H), jnp.float32)
    h0, c0, h1, c1 = zeros, zeros, zeros, zeros

    # T is small and static -> full unroll; state stays in registers and the
    # LLO scheduler sees the whole cross-iteration dependence chain.
    for t in range(T):
        g0 = xg0[t * B:(t + 1) * B, :] + jnp.dot(
            h0, whh0, preferred_element_type=jnp.float32)
        h0, c0 = cell(g0, c0)

        g1 = (jnp.dot(h0, wih1, preferred_element_type=jnp.float32)
              + jnp.dot(h1, whh1, preferred_element_type=jnp.float32)
              + b1)
        h1, c1 = cell(g1, c1)

    # fc on the last-timestep hidden state of the top layer.
    out_ref[...] = jnp.dot(h1, wfc, preferred_element_type=jnp.float32) + bfc


def prepare_params(torch_params):
    """Repack PyTorch-layout LSTM/Linear params for the kernel:
       * right-multiply layout (x @ W), gates i|f|g|o fused along the last dim,
       * ih/hh biases pre-summed,
       * i/f/o gate columns pre-scaled by 0.5 (exact) so the kernel's gate
         activation is a single tanh + lane-constant affine,
       * packed into 3 slabs to minimize per-call DMA count."""
    (w_ih_l0, w_hh_l0, b_ih_l0, b_hh_l0,
     w_ih_l1, w_hh_l1, b_ih_l1, b_hh_l1, w_fc, b_fc) = torch_params
    H4 = w_ih_l0.shape[0]
    H = H4 // 4
    O = w_fc.shape[0]

    wih0 = w_ih_l0.T                                  # (In, 4H)
    whh0 = w_hh_l0.T                                  # (H, 4H)
    b0 = (b_ih_l0 + b_hh_l0).reshape(1, H4)
    wih1 = w_ih_l1.T                                  # (H, 4H)
    whh1 = w_hh_l1.T                                  # (H, 4H)
    b1 = (b_ih_l1 + b_hh_l1).reshape(1, H4)
    wfc = w_fc.T                                      # (H, O)
    bfc = b_fc.reshape(1, O)                          # (1, O)

    col = jnp.arange(H4)
    scale = jnp.where((col >= 2 * H) & (col < 3 * H), 1.0, 0.5).astype(jnp.float32)
    wih0, whh0, b0 = wih0 * scale, whh0 * scale, b0 * scale
    wih1, whh1, b1 = wih1 * scale, whh1 * scale, b1 * scale

    w_in = jnp.concatenate([wih0, b0, b1], axis=0)        # (In+2, 4H)
    w_rec = jnp.concatenate([whh0, wih1, whh1], axis=0)   # (3H, 4H)
    w_fc_pack = jnp.concatenate([wfc, bfc], axis=0)       # (H+1, O)
    return w_in, w_rec, w_fc_pack


def lstm_model_pallas(x_bti, packed_params):
    """x_bti: (B, T, In) float32, batch_first like the PyTorch module."""
    w_in, w_rec, w_fc = packed_params
    B, T, In = x_bti.shape
    O = w_fc.shape[-1]

    # Time-major + flattened over (T, B) so the kernel can do one big
    # input-projection matmul before entering the recurrence.
    x_flat = jnp.transpose(x_bti, (1, 0, 2)).reshape(T * B, In)

    vmem = pl.BlockSpec(memory_space=pltpu.MemorySpace.VMEM)
    return pl.pallas_call(
        lstm_kernel,
        out_shape=jax.ShapeDtypeStruct((B, O), jnp.float32),
        in_specs=[vmem] * 4,
        out_specs=vmem,
    )(x_flat, w_in, w_rec, w_fc)


def lstm_model_ref(x_bti, torch_params):
    """Pure-JAX reference with PyTorch nn.LSTM semantics (for verification)."""
    (w_ih_l0, w_hh_l0, b_ih_l0, b_hh_l0,
     w_ih_l1, w_hh_l1, b_ih_l1, b_hh_l1, w_fc, b_fc) = torch_params
    H = w_hh_l0.shape[1]
    B, T, _ = x_bti.shape

    def cell(gates, c):
        i = jax.nn.sigmoid(gates[:, 0 * H:1 * H])
        f = jax.nn.sigmoid(gates[:, 1 * H:2 * H])
        g = jnp.tanh(gates[:, 2 * H:3 * H])
        o = jax.nn.sigmoid(gates[:, 3 * H:4 * H])
        c_new = f * c + i * g
        return o * jnp.tanh(c_new), c_new

    zeros = jnp.zeros((B, H), jnp.float32)
    h0, c0, h1, c1 = zeros, zeros, zeros, zeros
    for t in range(T):
        x_t = x_bti[:, t, :]
        h0, c0 = cell(x_t @ w_ih_l0.T + b_ih_l0 + h0 @ w_hh_l0.T + b_hh_l0, c0)
        h1, c1 = cell(h0 @ w_ih_l1.T + b_ih_l1 + h1 @ w_hh_l1.T + b_hh_l1, c1)
    return h1 @ w_fc.T + b_fc


def init_params(key, input_size, hidden_size, output_size):
    """PyTorch-shaped tensors with U(-1/sqrt(H), 1/sqrt(H)) init
       (gate order i, f, g, o concatenated along dim 0)."""
    H, In, O = hidden_size, input_size, output_size
    k = 1.0 / jnp.sqrt(jnp.float32(H))
    keys = jax.random.split(key, 10)

    def u(kk, shape):
        return jax.random.uniform(kk, shape, jnp.float32, -k, k)

    return (u(keys[0], (4 * H, In)), u(keys[1], (4 * H, H)),
            u(keys[2], (4 * H,)), u(keys[3], (4 * H,)),
            u(keys[4], (4 * H, H)), u(keys[5], (4 * H, H)),
            u(keys[6], (4 * H,)), u(keys[7], (4 * H,)),
            u(keys[8], (O, H)), u(keys[9], (O,)))


if __name__ == "__main__":
    # Small shapes consistent with the module: input_size=1, hidden=32
    # (4H=128 -> one full-width MXU pass), num_layers=2, output_size=1;
    # batch=2, seq=8.
    B, T, IN, H, OUT = 2, 8, 1, 32, 1

    key = jax.random.PRNGKey(0)
    k_x, k_p = jax.random.split(key)
    x = jax.random.normal(k_x, (B, T, IN), jnp.float32)   # (batch, seq, input_size)
    torch_params = init_params(k_p, IN, H, OUT)
    packed = jax.tree_util.tree_map(jax.block_until_ready,
                                    prepare_params(torch_params))

    out = jax.block_until_ready(lstm_model_pallas(x, packed))
    ref = jax.block_until_ready(lstm_model_ref(x, torch_params))

    assert out.shape == (B, OUT), (out.shape, (B, OUT))
    assert jnp.allclose(out, ref, atol=1e-5, rtol=1e-5), (out, ref)
    print("KERNEL_OK")
</pallas_src>

<mosaic_0001>
module attributes {stable_mosaic.version = 11 : i64} {
  func.func @lstm_kernel(%arg0: memref<16x1xf32, #tpu.memory_space<vmem>>, %arg1: memref<3x128xf32, #tpu.memory_space<vmem>>, %arg2: memref<96x128xf32, #tpu.memory_space<vmem>>, %arg3: memref<33x1xf32, #tpu.memory_space<vmem>>, %arg4: memref<2x1xf32, #tpu.memory_space<vmem>>) attributes {dimension_semantics = [], scalar_prefetch = 0 : i64, scratch_operands = 0 : i64, tpu.core_type = #tpu.core_type<tc>} {
    %c0 = arith.constant 0 : index
    %c0_0 = arith.constant 0 : index
    %0 = vector.load %arg1[%c0, %c0_0] : memref<3x128xf32, #tpu.memory_space<vmem>>, vector<1x128xf32>
    %c1 = arith.constant 1 : index
    %c0_1 = arith.constant 0 : index
    %1 = vector.load %arg1[%c1, %c0_1] : memref<3x128xf32, #tpu.memory_space<vmem>>, vector<1x128xf32>
    %c2 = arith.constant 2 : index
    %c0_2 = arith.constant 0 : index
    %2 = vector.load %arg1[%c2, %c0_2] : memref<3x128xf32, #tpu.memory_space<vmem>>, vector<1x128xf32>
    %c0_3 = arith.constant 0 : index
    %c0_4 = arith.constant 0 : index
    %3 = vector.load %arg2[%c0_3, %c0_4] : memref<96x128xf32, #tpu.memory_space<vmem>>, vector<32x128xf32>
    %c32 = arith.constant 32 : index
    %c0_5 = arith.constant 0 : index
    %4 = vector.load %arg2[%c32, %c0_5] : memref<96x128xf32, #tpu.memory_space<vmem>>, vector<32x128xf32>
    %c64 = arith.constant 64 : index
    %c0_6 = arith.constant 0 : index
    %5 = vector.load %arg2[%c64, %c0_6] : memref<96x128xf32, #tpu.memory_space<vmem>>, vector<32x128xf32>
    %c0_7 = arith.constant 0 : index
    %c0_8 = arith.constant 0 : index
    %6 = vector.load %arg3[%c0_7, %c0_8] : memref<33x1xf32, #tpu.memory_space<vmem>>, vector<32x1xf32>
    %c32_9 = arith.constant 32 : index
    %c0_10 = arith.constant 0 : index
    %7 = vector.load %arg3[%c32_9, %c0_10] : memref<33x1xf32, #tpu.memory_space<vmem>>, vector<1x1xf32>
    %8 = tpu.iota {dimensions = array<i32: 1>} : vector<1x128xi32>
    %c64_i32 = arith.constant 64 : i32
    %9 = vector.broadcast %c64_i32 : i32 to vector<1x128xi32>
    %10 = arith.cmpi sge, %8, %9 : vector<1x128xi32>
    %c96_i32 = arith.constant 96 : i32
    %11 = vector.broadcast %c96_i32 : i32 to vector<1x128xi32>
    %12 = arith.cmpi slt, %8, %11 : vector<1x128xi32>
    %13 = arith.andi %10, %12 : vector<1x128xi1>
    %cst = arith.constant 1.000000e+00 : f32
    %cst_11 = arith.constant 5.000000e-01 : f32
    %14 = vector.broadcast %cst : f32 to vector<1x128xf32>
    %15 = vector.broadcast %cst_11 : f32 to vector<1x128xf32>
    %16 = arith.select %13, %14, %15 : vector<1x128xi1>, vector<1x128xf32>
    %cst_12 = arith.constant 0.000000e+00 : f32
    %cst_13 = arith.constant 5.000000e-01 : f32
    %17 = vector.broadcast %cst_12 : f32 to vector<1x128xf32>
    %18 = vector.broadcast %cst_13 : f32 to vector<1x128xf32>
    %19 = arith.select %13, %17, %18 : vector<1x128xi1>, vector<1x128xf32>
    %c0_14 = arith.constant 0 : index
    %c0_15 = arith.constant 0 : index
    %20 = vector.load %arg0[%c0_14, %c0_15] : memref<16x1xf32, #tpu.memory_space<vmem>>, vector<16x1xf32>
    %cst_16 = arith.constant dense<0.000000e+00> : vector<16x128xf32>
    %21 = tpu.matmul %20, %0, %cst_16 {dimension_numbers = #tpu.dot_dimension_numbers<[1], [0], [0], [1], [0, 0, 1, 1], [], []>} : vector<16x1xf32>, vector<1x128xf32>, vector<16x128xf32> -> vector<16x128xf32>
    %22 = vector.broadcast %1 : vector<1x128xf32> to vector<16x128xf32>
    %23 = arith.addf %21, %22 : vector<16x128xf32>
    %cst_17 = arith.constant 0.000000e+00 : f32
    %24 = vector.broadcast %cst_17 : f32 to vector<2x32xf32>
    %25 = vector.extract_strided_slice %23 {offsets = [0, 0], sizes = [2, 128], strides = [1, 1]} : vector<16x128xf32> to vector<2x128xf32>
    %cst_18 = arith.constant dense<0.000000e+00> : vector<2x128xf32>
    %26 = tpu.matmul %24, %3, %cst_18 {dimension_numbers = #tpu.dot_dimension_numbers<[1], [0], [0], [1], [0, 0, 1, 1], [], []>} : vector<2x32xf32>, vector<32x128xf32>, vector<2x128xf32> -> vector<2x128xf32>
    %27 = arith.addf %25, %26 : vector<2x128xf32>
    %28 = math.tanh %27 : vector<2x128xf32>
    %29 = vector.broadcast %16 : vector<1x128xf32> to vector<2x128xf32>
    %30 = arith.mulf %29, %28 : vector<2x128xf32>
    %31 = vector.broadcast %19 : vector<1x128xf32> to vector<2x128xf32>
    %32 = arith.addf %30, %31 : vector<2x128xf32>
    %33 = vector.extract_strided_slice %32 {offsets = [0, 0], sizes = [2, 32], strides = [1, 1]} : vector<2x128xf32> to vector<2x32xf32>
    %34 = vector.extract_strided_slice %32 {offsets = [0, 32], sizes = [2, 32], strides = [1, 1]} : vector<2x128xf32> to vector<2x32xf32>
    %35 = vector.extract_strided_slice %32 {offsets = [0, 64], sizes = [2, 32], strides = [1, 1]} : vector<2x128xf32> to vector<2x32xf32>
    %36 = vector.extract_strided_slice %32 {offsets = [0, 96], sizes = [2, 32], strides = [1, 1]} : vector<2x128xf32> to vector<2x32xf32>
    %37 = arith.mulf %34, %24 : vector<2x32xf32>
    %38 = arith.mulf %33, %35 : vector<2x32xf32>
    %39 = arith.addf %37, %38 : vector<2x32xf32>
    %40 = math.tanh %39 : vector<2x32xf32>
    %41 = arith.mulf %36, %40 : vector<2x32xf32>
    %cst_19 = arith.constant dense<0.000000e+00> : vector<2x128xf32>
    %42 = tpu.matmul %41, %4, %cst_19 {dimension_numbers = #tpu.dot_dimension_numbers<[1], [0], [0], [1], [0, 0, 1, 1], [], []>} : vector<2x32xf32>, vector<32x128xf32>, vector<2x128xf32> -> vector<2x128xf32>
    %cst_20 = arith.constant dense<0.000000e+00> : vector<2x128xf32>
    %43 = tpu.matmul %24, %5, %cst_20 {dimension_numbers = #tpu.dot_dimension_numbers<[1], [0], [0], [1], [0, 0, 1, 1], [], []>} : vector<2x32xf32>, vector<32x128xf32>, vector<2x128xf32> -> vector<2x128xf32>
    %44 = arith.addf %42, %43 : vector<2x128xf32>
    %45 = vector.broadcast %2 : vector<1x128xf32> to vector<2x128xf32>
    %46 = arith.addf %44, %45 : vector<2x128xf32>
    %47 = math.tanh %46 : vector<2x128xf32>
    %48 = vector.broadcast %16 : vector<1x128xf32> to vector<2x128xf32>
    %49 = arith.mulf %48, %47 : vector<2x128xf32>
    %50 = vector.broadcast %19 : vector<1x128xf32> to vector<2x128xf32>
    %51 = arith.addf %49, %50 : vector<2x128xf32>
    %52 = vector.extract_strided_slice %51 {offsets = [0, 0], sizes = [2, 32], strides = [1, 1]} : vector<2x128xf32> to vector<2x32xf32>
    %53 = vector.extract_strided_slice %51 {offsets = [0, 32], sizes = [2, 32], strides = [1, 1]} : vector<2x128xf32> to vector<2x32xf32>
    %54 = vector.extract_strided_slice %51 {offsets = [0, 64], sizes = [2, 32], strides = [1, 1]} : vector<2x128xf32> to vector<2x32xf32>
    %55 = vector.extract_strided_slice %51 {offsets = [0, 96], sizes = [2, 32], strides = [1, 1]} : vector<2x128xf32> to vector<2x32xf32>
    %56 = arith.mulf %53, %24 : vector<2x32xf32>
    %57 = arith.mulf %52, %54 : vector<2x32xf32>
    %58 = arith.addf %56, %57 : vector<2x32xf32>
    %59 = math.tanh %58 : vector<2x32xf32>
    %60 = arith.mulf %55, %59 : vector<2x32xf32>
    %61 = vector.extract_strided_slice %23 {offsets = [2, 0], sizes = [2, 128], strides = [1, 1]} : vector<16x128xf32> to vector<2x128xf32>
    %cst_21 = arith.constant dense<0.000000e+00> : vector<2x128xf32>
    %62 = tpu.matmul %41, %3, %cst_21 {dimension_numbers = #tpu.dot_dimension_numbers<[1], [0], [0], [1], [0, 0, 1, 1], [], []>} : vector<2x32xf32>, vector<32x128xf32>, vector<2x128xf32> -> vector<2x128xf32>
    %63 = arith.addf %61, %62 : vector<2x128xf32>
    %64 = math.tanh %63 : vector<2x128xf32>
    %65 = vector.broadcast %16 : vector<1x128xf32> to vector<2x128xf32>
    %66 = arith.mulf %65, %64 : vector<2x128xf32>
    %67 = vector.broadcast %19 : vector<1x128xf32> to vector<2x128xf32>
    %68 = arith.addf %66, %67 : vector<2x128xf32>
    %69 = vector.extract_strided_slice %68 {offsets = [0, 0], sizes = [2, 32], strides = [1, 1]} : vector<2x128xf32> to vector<2x32xf32>
    %70 = vector.extract_strided_slice %68 {offsets = [0, 32], sizes = [2, 32], strides = [1, 1]} : vector<2x128xf32> to vector<2x32xf32>
    %71 = vector.extract_strided_slice %68 {offsets = [0, 64], sizes = [2, 32], strides = [1, 1]} : vector<2x128xf32> to vector<2x32xf32>
    %72 = vector.extract_strided_slice %68 {offsets = [0, 96], sizes = [2, 32], strides = [1, 1]} : vector<2x128xf32> to vector<2x32xf32>
    %73 = arith.mulf %70, %39 : vector<2x32xf32>
    %74 = arith.mulf %69, %71 : vector<2x32xf32>
    %75 = arith.addf %73, %74 : vector<2x32xf32>
    %76 = math.tanh %75 : vector<2x32xf32>
    %77 = arith.mulf %72, %76 : vector<2x32xf32>
    %cst_22 = arith.constant dense<0.000000e+00> : vector<2x128xf32>
    %78 = tpu.matmul %77, %4, %cst_22 {dimension_numbers = #tpu.dot_dimension_numbers<[1], [0], [0], [1], [0, 0, 1, 1], [], []>} : vector<2x32xf32>, vector<32x128xf32>, vector<2x128xf32> -> vector<2x128xf32>
    %cst_23 = arith.constant dense<0.000000e+00> : vector<2x128xf32>
    %79 = tpu.matmul %60, %5, %cst_23 {dimension_numbers = #tpu.dot_dimension_numbers<[1], [0], [0], [1], [0, 0, 1, 1], [], []>} : vector<2x32xf32>, vector<32x128xf32>, vector<2x128xf32> -> vector<2x128xf32>
    %80 = arith.addf %78, %79 : vector<2x128xf32>
    %81 = vector.broadcast %2 : vector<1x128xf32> to vector<2x128xf32>
    %82 = arith.addf %80, %81 : vector<2x128xf32>
    %83 = math.tanh %82 : vector<2x128xf32>
    %84 = vector.broadcast %16 : vector<1x128xf32> to vector<2x128xf32>
    %85 = arith.mulf %84, %83 : vector<2x128xf32>
    %86 = vector.broadcast %19 : vector<1x128xf32> to vector<2x128xf32>
    %87 = arith.addf %85, %86 : vector<2x128xf32>
    %88 = vector.extract_strided_slice %87 {offsets = [0, 0], sizes = [2, 32], strides = [1, 1]} : vector<2x128xf32> to vector<2x32xf32>
    %89 = vector.extract_strided_slice %87 {offsets = [0, 32], sizes = [2, 32], strides = [1, 1]} : vector<2x128xf32> to vector<2x32xf32>
    %90 = vector.extract_strided_slice %87 {offsets = [0, 64], sizes = [2, 32], strides = [1, 1]} : vector<2x128xf32> to vector<2x32xf32>
    %91 = vector.extract_strided_slice %87 {offsets = [0, 96], sizes = [2, 32], strides = [1, 1]} : vector<2x128xf32> to vector<2x32xf32>
    %92 = arith.mulf %89, %58 : vector<2x32xf32>
    %93 = arith.mulf %88, %90 : vector<2x32xf32>
    %94 = arith.addf %92, %93 : vector<2x32xf32>
    %95 = math.tanh %94 : vector<2x32xf32>
    %96 = arith.mulf %91, %95 : vector<2x32xf32>
    %97 = vector.extract_strided_slice %23 {offsets = [4, 0], sizes = [2, 128], strides = [1, 1]} : vector<16x128xf32> to vector<2x128xf32>
    %cst_24 = arith.constant dense<0.000000e+00> : vector<2x128xf32>
    %98 = tpu.matmul %77, %3, %cst_24 {dimension_numbers = #tpu.dot_dimension_numbers<[1], [0], [0], [1], [0, 0, 1, 1], [], []>} : vector<2x32xf32>, vector<32x128xf32>, vector<2x128xf32> -> vector<2x128xf32>
    %99 = arith.addf %97, %98 : vector<2x128xf32>
    %100 = math.tanh %99 : vector<2x128xf32>
    %101 = vector.broadcast %16 : vector<1x128xf32> to vector<2x128xf32>
    %102 = arith.mulf %101, %100 : vector<2x128xf32>
    %103 = vector.broadcast %19 : vector<1x128xf32> to vector<2x128xf32>
    %104 = arith.addf %102, %103 : vector<2x128xf32>
    %105 = vector.extract_strided_slice %104 {offsets = [0, 0], sizes = [2, 32], strides = [1, 1]} : vector<2x128xf32> to vector<2x32xf32>
    %106 = vector.extract_strided_slice %104 {offsets = [0, 32], sizes = [2, 32], strides = [1, 1]} : vector<2x128xf32> to vector<2x32xf32>
    %107 = vector.extract_strided_slice %104 {offsets = [0, 64], sizes = [2, 32], strides = [1, 1]} : vector<2x128xf32> to vector<2x32xf32>
    %108 = vector.extract_strided_slice %104 {offsets = [0, 96], sizes = [2, 32], strides = [1, 1]} : vector<2x128xf32> to vector<2x32xf32>
    %109 = arith.mulf %106, %75 : vector<2x32xf32>
    %110 = arith.mulf %105, %107 : vector<2x32xf32>
    %111 = arith.addf %109, %110 : vector<2x32xf32>
    %112 = math.tanh %111 : vector<2x32xf32>
    %113 = arith.mulf %108, %112 : vector<2x32xf32>
    %cst_25 = arith.constant dense<0.000000e+00> : vector<2x128xf32>
    %114 = tpu.matmul %113, %4, %cst_25 {dimension_numbers = #tpu.dot_dimension_numbers<[1], [0], [0], [1], [0, 0, 1, 1], [], []>} : vector<2x32xf32>, vector<32x128xf32>, vector<2x128xf32> -> vector<2x128xf32>
    %cst_26 = arith.constant dense<0.000000e+00> : vector<2x128xf32>
    %115 = tpu.matmul %96, %5, %cst_26 {dimension_numbers = #tpu.dot_dimension_numbers<[1], [0], [0], [1], [0, 0, 1, 1], [], []>} : vector<2x32xf32>, vector<32x128xf32>, vector<2x128xf32> -> vector<2x128xf32>
    %116 = arith.addf %114, %115 : vector<2x128xf32>
    %117 = vector.broadcast %2 : vector<1x128xf32> to vector<2x128xf32>
    %118 = arith.addf %116, %117 : vector<2x128xf32>
    %119 = math.tanh %118 : vector<2x128xf32>
    %120 = vector.broadcast %16 : vector<1x128xf32> to vector<2x128xf32>
    %121 = arith.mulf %120, %119 : vector<2x128xf32>
    %122 = vector.broadcast %19 : vector<1x128xf32> to vector<2x128xf32>
    %123 = arith.addf %121, %122 : vector<2x128xf32>
    %124 = vector.extract_strided_slice %123 {offsets = [0, 0], sizes = [2, 32], strides = [1, 1]} : vector<2x128xf32> to vector<2x32xf32>
    %125 = vector.extract_strided_slice %123 {offsets = [0, 32], sizes = [2, 32], strides = [1, 1]} : vector<2x128xf32> to vector<2x32xf32>
    %126 = vector.extract_strided_slice %123 {offsets = [0, 64], sizes = [2, 32], strides = [1, 1]} : vector<2x128xf32> to vector<2x32xf32>
    %127 = vector.extract_strided_slice %123 {offsets = [0, 96], sizes = [2, 32], strides = [1, 1]} : vector<2x128xf32> to vector<2x32xf32>
    %128 = arith.mulf %125, %94 : vector<2x32xf32>
    %129 = arith.mulf %124, %126 : vector<2x32xf32>
    %130 = arith.addf %128, %129 : vector<2x32xf32>
    %131 = math.tanh %130 : vector<2x32xf32>
    %132 = arith.mulf %127, %131 : vector<2x32xf32>
    %133 = vector.extract_strided_slice %23 {offsets = [6, 0], sizes = [2, 128], strides = [1, 1]} : vector<16x128xf32> to vector<2x128xf32>
    %cst_27 = arith.constant dense<0.000000e+00> : vector<2x128xf32>
    %134 = tpu.matmul %113, %3, %cst_27 {dimension_numbers = #tpu.dot_dimension_numbers<[1], [0], [0], [1], [0, 0, 1, 1], [], []>} : vector<2x32xf32>, vector<32x128xf32>, vector<2x128xf32> -> vector<2x128xf32>
    %135 = arith.addf %133, %134 : vector<2x128xf32>
    %136 = math.tanh %135 : vector<2x128xf32>
    %137 = vector.broadcast %16 : vector<1x128xf32> to vector<2x128xf32>
    %138 = arith.mulf %137, %136 : vector<2x128xf32>
    %139 = vector.broadcast %19 : vector<1x128xf32> to vector<2x128xf32>
    %140 = arith.addf %138, %139 : vector<2x128xf32>
    %141 = vector.extract_strided_slice %140 {offsets = [0, 0], sizes = [2, 32], strides = [1, 1]} : vector<2x128xf32> to vector<2x32xf32>
    %142 = vector.extract_strided_slice %140 {offsets = [0, 32], sizes = [2, 32], strides = [1, 1]} : vector<2x128xf32> to vector<2x32xf32>
    %143 = vector.extract_strided_slice %140 {offsets = [0, 64], sizes = [2, 32], strides = [1, 1]} : vector<2x128xf32> to vector<2x32xf32>
    %144 = vector.extract_strided_slice %140 {offsets = [0, 96], sizes = [2, 32], strides = [1, 1]} : vector<2x128xf32> to vector<2x32xf32>
    %145 = arith.mulf %142, %111 : vector<2x32xf32>
    %146 = arith.mulf %141, %143 : vector<2x32xf32>
    %147 = arith.addf %145, %146 : vector<2x32xf32>
    %148 = math.tanh %147 : vector<2x32xf32>
    %149 = arith.mulf %144, %148 : vector<2x32xf32>
    %cst_28 = arith.constant dense<0.000000e+00> : vector<2x128xf32>
    %150 = tpu.matmul %149, %4, %cst_28 {dimension_numbers = #tpu.dot_dimension_numbers<[1], [0], [0], [1], [0, 0, 1, 1], [], []>} : vector<2x32xf32>, vector<32x128xf32>, vector<2x128xf32> -> vector<2x128xf32>
    %cst_29 = arith.constant dense<0.000000e+00> : vector<2x128xf32>
    %151 = tpu.matmul %132, %5, %cst_29 {dimension_numbers = #tpu.dot_dimension_numbers<[1], [0], [0], [1], [0, 0, 1, 1], [], []>} : vector<2x32xf32>, vector<32x128xf32>, vector<2x128xf32> -> vector<2x128xf32>
    %152 = arith.addf %150, %151 : vector<2x128xf32>
    %153 = vector.broadcast %2 : vector<1x128xf32> to vector<2x128xf32>
    %154 = arith.addf %152, %153 : vector<2x128xf32>
    %155 = math.tanh %154 : vector<2x128xf32>
    %156 = vector.broadcast %16 : vector<1x128xf32> to vector<2x128xf32>
    %157 = arith.mulf %156, %155 : vector<2x128xf32>
    %158 = vector.broadcast %19 : vector<1x128xf32> to vector<2x128xf32>
    %159 = arith.addf %157, %158 : vector<2x128xf32>
    %160 = vector.extract_strided_slice %159 {offsets = [0, 0], sizes = [2, 32], strides = [1, 1]} : vector<2x128xf32> to vector<2x32xf32>
    %161 = vector.extract_strided_slice %159 {offsets = [0, 32], sizes = [2, 32], strides = [1, 1]} : vector<2x128xf32> to vector<2x32xf32>
    %162 = vector.extract_strided_slice %159 {offsets = [0, 64], sizes = [2, 32], strides = [1, 1]} : vector<2x128xf32> to vector<2x32xf32>
    %163 = vector.extract_strided_slice %159 {offsets = [0, 96], sizes = [2, 32], strides = [1, 1]} : vector<2x128xf32> to vector<2x32xf32>
    %164 = arith.mulf %161, %130 : vector<2x32xf32>
    %165 = arith.mulf %160, %162 : vector<2x32xf32>
    %166 = arith.addf %164, %165 : vector<2x32xf32>
    %167 = math.tanh %166 : vector<2x32xf32>
    %168 = arith.mulf %163, %167 : vector<2x32xf32>
    %169 = vector.extract_strided_slice %23 {offsets = [8, 0], sizes = [2, 128], strides = [1, 1]} : vector<16x128xf32> to vector<2x128xf32>
    %cst_30 = arith.constant dense<0.000000e+00> : vector<2x128xf32>
    %170 = tpu.matmul %149, %3, %cst_30 {dimension_numbers = #tpu.dot_dimension_numbers<[1], [0], [0], [1], [0, 0, 1, 1], [], []>} : vector<2x32xf32>, vector<32x128xf32>, vector<2x128xf32> -> vector<2x128xf32>
    %171 = arith.addf %169, %170 : vector<2x128xf32>
    %172 = math.tanh %171 : vector<2x128xf32>
    %173 = vector.broadcast %16 : vector<1x128xf32> to vector<2x128xf32>
    %174 = arith.mulf %173, %172 : vector<2x128xf32>
    %175 = vector.broadcast %19 : vector<1x128xf32> to vector<2x128xf32>
    %176 = arith.addf %174, %175 : vector<2x128xf32>
    %177 = vector.extract_strided_slice %176 {offsets = [0, 0], sizes = [2, 32], strides = [1, 1]} : vector<2x128xf32> to vector<2x32xf32>
    %178 = vector.extract_strided_slice %176 {offsets = [0, 32], sizes = [2, 32], strides = [1, 1]} : vector<2x128xf32> to vector<2x32xf32>
    %179 = vector.extract_strided_slice %176 {offsets = [0, 64], sizes = [2, 32], strides = [1, 1]} : vector<2x128xf32> to vector<2x32xf32>
    %180 = vector.extract_strided_slice %176 {offsets = [0, 96], sizes = [2, 32], strides = [1, 1]} : vector<2x128xf32> to vector<2x32xf32>
    %181 = arith.mulf %178, %147 : vector<2x32xf32>
    %182 = arith.mulf %177, %179 : vector<2x32xf32>
    %183 = arith.addf %181, %182 : vector<2x32xf32>
    %184 = math.tanh %183 : vector<2x32xf32>
    %185 = arith.mulf %180, %184 : vector<2x32xf32>
    %cst_31 = arith.constant dense<0.000000e+00> : vector<2x128xf32>
    %186 = tpu.matmul %185, %4, %cst_31 {dimension_numbers = #tpu.dot_dimension_numbers<[1], [0], [0], [1], [0, 0, 1, 1], [], []>} : vector<2x32xf32>, vector<32x128xf32>, vector<2x128xf32> -> vector<2x128xf32>
    %cst_32 = arith.constant dense<0.000000e+00> : vector<2x128xf32>
    %187 = tpu.matmul %168, %5, %cst_32 {dimension_numbers = #tpu.dot_dimension_numbers<[1], [0], [0], [1], [0, 0, 1, 1], [], []>} : vector<2x32xf32>, vector<32x128xf32>, vector<2x128xf32> -> vector<2x128xf32>
    %188 = arith.addf %186, %187 : vector<2x128xf32>
    %189 = vector.broadcast %2 : vector<1x128xf32> to vector<2x128xf32>
    %190 = arith.addf %188, %189 : vector<2x128xf32>
    %191 = math.tanh %190 : vector<2x128xf32>
    %192 = vector.broadcast %16 : vector<1x128xf32> to vector<2x128xf32>
    %193 = arith.mulf %192, %191 : vector<2x128xf32>
    %194 = vector.broadcast %19 : vector<1x128xf32> to vector<2x128xf32>
    %195 = arith.addf %193, %194 : vector<2x128xf32>
    %196 = vector.extract_strided_slice %195 {offsets = [0, 0], sizes = [2, 32], strides = [1, 1]} : vector<2x128xf32> to vector<2x32xf32>
    %197 = vector.extract_strided_slice %195 {offsets = [0, 32], sizes = [2, 32], strides = [1, 1]} : vector<2x128xf32> to vector<2x32xf32>
    %198 = vector.extract_strided_slice %195 {offsets = [0, 64], sizes = [2, 32], strides = [1, 1]} : vector<2x128xf32> to vector<2x32xf32>
    %199 = vector.extract_strided_slice %195 {offsets = [0, 96], sizes = [2, 32], strides = [1, 1]} : vector<2x128xf32> to vector<2x32xf32>
    %200 = arith.mulf %197, %166 : vector<2x32xf32>
    %201 = arith.mulf %196, %198 : vector<2x32xf32>
    %202 = arith.addf %200, %201 : vector<2x32xf32>
    %203 = math.tanh %202 : vector<2x32xf32>
    %204 = arith.mulf %199, %203 : vector<2x32xf32>
    %205 = vector.extract_strided_slice %23 {offsets = [10, 0], sizes = [2, 128], strides = [1, 1]} : vector<16x128xf32> to vector<2x128xf32>
    %cst_33 = arith.constant dense<0.000000e+00> : vector<2x128xf32>
    %206 = tpu.matmul %185, %3, %cst_33 {dimension_numbers = #tpu.dot_dimension_numbers<[1], [0], [0], [1], [0, 0, 1, 1], [], []>} : vector<2x32xf32>, vector<32x128xf32>, vector<2x128xf32> -> vector<2x128xf32>
    %207 = arith.addf %205, %206 : vector<2x128xf32>
    %208 = math.tanh %207 : vector<2x128xf32>
    %209 = vector.broadcast %16 : vector<1x128xf32> to vector<2x128xf32>
    %210 = arith.mulf %209, %208 : vector<2x128xf32>
    %211 = vector.broadcast %19 : vector<1x128xf32> to vector<2x128xf32>
    %212 = arith.addf %210, %211 : vector<2x128xf32>
    %213 = vector.extract_strided_slice %212 {offsets = [0, 0], sizes = [2, 32], strides = [1, 1]} : vector<2x128xf32> to vector<2x32xf32>
    %214 = vector.extract_strided_slice %212 {offsets = [0, 32], sizes = [2, 32], strides = [1, 1]} : vector<2x128xf32> to vector<2x32xf32>
    %215 = vector.extract_strided_slice %212 {offsets = [0, 64], sizes = [2, 32], strides = [1, 1]} : vector<2x128xf32> to vector<2x32xf32>
    %216 = vector.extract_strided_slice %212 {offsets = [0, 96], sizes = [2, 32], strides = [1, 1]} : vector<2x128xf32> to vector<2x32xf32>
    %217 = arith.mulf %214, %183 : vector<2x32xf32>
    %218 = arith.mulf %213, %215 : vector<2x32xf32>
    %219 = arith.addf %217, %218 : vector<2x32xf32>
    %220 = math.tanh %219 : vector<2x32xf32>
    %221 = arith.mulf %216, %220 : vector<2x32xf32>
    %cst_34 = arith.constant dense<0.000000e+00> : vector<2x128xf32>
    %222 = tpu.matmul %221, %4, %cst_34 {dimension_numbers = #tpu.dot_dimension_numbers<[1], [0], [0], [1], [0, 0, 1, 1], [], []>} : vector<2x32xf32>, vector<32x128xf32>, vector<2x128xf32> -> vector<2x128xf32>
    %cst_35 = arith.constant dense<0.000000e+00> : vector<2x128xf32>
    %223 = tpu.matmul %204, %5, %cst_35 {dimension_numbers = #tpu.dot_dimension_numbers<[1], [0], [0], [1], [0, 0, 1, 1], [], []>} : vector<2x32xf32>, vector<32x128xf32>, vector<2x128xf32> -> vector<2x128xf32>
    %224 = arith.addf %222, %223 : vector<2x128xf32>
    %225 = vector.broadcast %2 : vector<1x128xf32> to vector<2x128xf32>
    %226 = arith.addf %224, %225 : vector<2x128xf32>
    %227 = math.tanh %226 : vector<2x128xf32>
    %228 = vector.broadcast %16 : vector<1x128xf32> to vector<2x128xf32>
    %229 = arith.mulf %228, %227 : vector<2x128xf32>
    %230 = vector.broadcast %19 : vector<1x128xf32> to vector<2x128xf32>
    %231 = arith.addf %229, %230 : vector<2x128xf32>
    %232 = vector.extract_strided_slice %231 {offsets = [0, 0], sizes = [2, 32], strides = [1, 1]} : vector<2x128xf32> to vector<2x32xf32>
    %233 = vector.extract_strided_slice %231 {offsets = [0, 32], sizes = [2, 32], strides = [1, 1]} : vector<2x128xf32> to vector<2x32xf32>
    %234 = vector.extract_strided_slice %231 {offsets = [0, 64], sizes = [2, 32], strides = [1, 1]} : vector<2x128xf32> to vector<2x32xf32>
    %235 = vector.extract_strided_slice %231 {offsets = [0, 96], sizes = [2, 32], strides = [1, 1]} : vector<2x128xf32> to vector<2x32xf32>
    %236 = arith.mulf %233, %202 : vector<2x32xf32>
    %237 = arith.mulf %232, %234 : vector<2x32xf32>
    %238 = arith.addf %236, %237 : vector<2x32xf32>
    %239 = math.tanh %238 : vector<2x32xf32>
    %240 = arith.mulf %235, %239 : vector<2x32xf32>
    %241 = vector.extract_strided_slice %23 {offsets = [12, 0], sizes = [2, 128], strides = [1, 1]} : vector<16x128xf32> to vector<2x128xf32>
    %cst_36 = arith.constant dense<0.000000e+00> : vector<2x128xf32>
    %242 = tpu.matmul %221, %3, %cst_36 {dimension_numbers = #tpu.dot_dimension_numbers<[1], [0], [0], [1], [0, 0, 1, 1], [], []>} : vector<2x32xf32>, vector<32x128xf32>, vector<2x128xf32> -> vector<2x128xf32>
    %243 = arith.addf %241, %242 : vector<2x128xf32>
    %244 = math.tanh %243 : vector<2x128xf32>
    %245 = vector.broadcast %16 : vector<1x128xf32> to vector<2x128xf32>
    %246 = arith.mulf %245, %244 : vector<2x128xf32>
    %247 = vector.broadcast %19 : vector<1x128xf32> to vector<2x128xf32>
    %248 = arith.addf %246, %247 : vector<2x128xf32>
    %249 = vector.extract_strided_slice %248 {offsets = [0, 0], sizes = [2, 32], strides = [1, 1]} : vector<2x128xf32> to vector<2x32xf32>
    %250 = vector.extract_strided_slice %248 {offsets = [0, 32], sizes = [2, 32], strides = [1, 1]} : vector<2x128xf32> to vector<2x32xf32>
    %251 = vector.extract_strided_slice %248 {offsets = [0, 64], sizes = [2, 32], strides = [1, 1]} : vector<2x128xf32> to vector<2x32xf32>
    %252 = vector.extract_strided_slice %248 {offsets = [0, 96], sizes = [2, 32], strides = [1, 1]} : vector<2x128xf32> to vector<2x32xf32>
    %253 = arith.mulf %250, %219 : vector<2x32xf32>
    %254 = arith.mulf %249, %251 : vector<2x32xf32>
    %255 = arith.addf %253, %254 : vector<2x32xf32>
    %256 = math.tanh %255 : vector<2x32xf32>
    %257 = arith.mulf %252, %256 : vector<2x32xf32>
    %cst_37 = arith.constant dense<0.000000e+00> : vector<2x128xf32>
    %258 = tpu.matmul %257, %4, %cst_37 {dimension_numbers = #tpu.dot_dimension_numbers<[1], [0], [0], [1], [0, 0, 1, 1], [], []>} : vector<2x32xf32>, vector<32x128xf32>, vector<2x128xf32> -> vector<2x128xf32>
    %cst_38 = arith.constant dense<0.000000e+00> : vector<2x128xf32>
    %259 = tpu.matmul %240, %5, %cst_38 {dimension_numbers = #tpu.dot_dimension_numbers<[1], [0], [0], [1], [0, 0, 1, 1], [], []>} : vector<2x32xf32>, vector<32x128xf32>, vector<2x128xf32> -> vector<2x128xf32>
    %260 = arith.addf %258, %259 : vector<2x128xf32>
    %261 = vector.broadcast %2 : vector<1x128xf32> to vector<2x128xf32>
    %262 = arith.addf %260, %261 : vector<2x128xf32>
    %263 = math.tanh %262 : vector<2x128xf32>
    %264 = vector.broadcast %16 : vector<1x128xf32> to vector<2x128xf32>
    %265 = arith.mulf %264, %263 : vector<2x128xf32>
    %266 = vector.broadcast %19 : vector<1x128xf32> to vector<2x128xf32>
    %267 = arith.addf %265, %266 : vector<2x128xf32>
    %268 = vector.extract_strided_slice %267 {offsets = [0, 0], sizes = [2, 32], strides = [1, 1]} : vector<2x128xf32> to vector<2x32xf32>
    %269 = vector.extract_strided_slice %267 {offsets = [0, 32], sizes = [2, 32], strides = [1, 1]} : vector<2x128xf32> to vector<2x32xf32>
    %270 = vector.extract_strided_slice %267 {offsets = [0, 64], sizes = [2, 32], strides = [1, 1]} : vector<2x128xf32> to vector<2x32xf32>
    %271 = vector.extract_strided_slice %267 {offsets = [0, 96], sizes = [2, 32], strides = [1, 1]} : vector<2x128xf32> to vector<2x32xf32>
    %272 = arith.mulf %269, %238 : vector<2x32xf32>
    %273 = arith.mulf %268, %270 : vector<2x32xf32>
    %274 = arith.addf %272, %273 : vector<2x32xf32>
    %275 = math.tanh %274 : vector<2x32xf32>
    %276 = arith.mulf %271, %275 : vector<2x32xf32>
    %277 = vector.extract_strided_slice %23 {offsets = [14, 0], sizes = [2, 128], strides = [1, 1]} : vector<16x128xf32> to vector<2x128xf32>
    %cst_39 = arith.constant dense<0.000000e+00> : vector<2x128xf32>
    %278 = tpu.matmul %257, %3, %cst_39 {dimension_numbers = #tpu.dot_dimension_numbers<[1], [0], [0], [1], [0, 0, 1, 1], [], []>} : vector<2x32xf32>, vector<32x128xf32>, vector<2x128xf32> -> vector<2x128xf32>
    %279 = arith.addf %277, %278 : vector<2x128xf32>
    %280 = math.tanh %279 : vector<2x128xf32>
    %281 = vector.broadcast %16 : vector<1x128xf32> to vector<2x128xf32>
    %282 = arith.mulf %281, %280 : vector<2x128xf32>
    %283 = vector.broadcast %19 : vector<1x128xf32> to vector<2x128xf32>
    %284 = arith.addf %282, %283 : vector<2x128xf32>
    %285 = vector.extract_strided_slice %284 {offsets = [0, 0], sizes = [2, 32], strides = [1, 1]} : vector<2x128xf32> to vector<2x32xf32>
    %286 = vector.extract_strided_slice %284 {offsets = [0, 32], sizes = [2, 32], strides = [1, 1]} : vector<2x128xf32> to vector<2x32xf32>
    %287 = vector.extract_strided_slice %284 {offsets = [0, 64], sizes = [2, 32], strides = [1, 1]} : vector<2x128xf32> to vector<2x32xf32>
    %288 = vector.extract_strided_slice %284 {offsets = [0, 96], sizes = [2, 32], strides = [1, 1]} : vector<2x128xf32> to vector<2x32xf32>
    %289 = arith.mulf %286, %255 : vector<2x32xf32>
    %290 = arith.mulf %285, %287 : vector<2x32xf32>
    %291 = arith.addf %289, %290 : vector<2x32xf32>
    %292 = math.tanh %291 : vector<2x32xf32>
    %293 = arith.mulf %288, %292 : vector<2x32xf32>
    %cst_40 = arith.constant dense<0.000000e+00> : vector<2x128xf32>
    %294 = tpu.matmul %293, %4, %cst_40 {dimension_numbers = #tpu.dot_dimension_numbers<[1], [0], [0], [1], [0, 0, 1, 1], [], []>} : vector<2x32xf32>, vector<32x128xf32>, vector<2x128xf32> -> vector<2x128xf32>
    %cst_41 = arith.constant dense<0.000000e+00> : vector<2x128xf32>
    %295 = tpu.matmul %276, %5, %cst_41 {dimension_numbers = #tpu.dot_dimension_numbers<[1], [0], [0], [1], [0, 0, 1, 1], [], []>} : vector<2x32xf32>, vector<32x128xf32>, vector<2x128xf32> -> vector<2x128xf32>
    %296 = arith.addf %294, %295 : vector<2x128xf32>
    %297 = vector.broadcast %2 : vector<1x128xf32> to vector<2x128xf32>
    %298 = arith.addf %296, %297 : vector<2x128xf32>
    %299 = math.tanh %298 : vector<2x128xf32>
    %300 = vector.broadcast %16 : vector<1x128xf32> to vector<2x128xf32>
    %301 = arith.mulf %300, %299 : vector<2x128xf32>
    %302 = vector.broadcast %19 : vector<1x128xf32> to vector<2x128xf32>
    %303 = arith.addf %301, %302 : vector<2x128xf32>
    %304 = vector.extract_strided_slice %303 {offsets = [0, 0], sizes = [2, 32], strides = [1, 1]} : vector<2x128xf32> to vector<2x32xf32>
    %305 = vector.extract_strided_slice %303 {offsets = [0, 32], sizes = [2, 32], strides = [1, 1]} : vector<2x128xf32> to vector<2x32xf32>
    %306 = vector.extract_strided_slice %303 {offsets = [0, 64], sizes = [2, 32], strides = [1, 1]} : vector<2x128xf32> to vector<2x32xf32>
    %307 = vector.extract_strided_slice %303 {offsets = [0, 96], sizes = [2, 32], strides = [1, 1]} : vector<2x128xf32> to vector<2x32xf32>
    %308 = arith.mulf %305, %274 : vector<2x32xf32>
    %309 = arith.mulf %304, %306 : vector<2x32xf32>
    %310 = arith.addf %308, %309 : vector<2x32xf32>
    %311 = math.tanh %310 : vector<2x32xf32>
    %312 = arith.mulf %307, %311 : vector<2x32xf32>
    %cst_42 = arith.constant dense<0.000000e+00> : vector<2x1xf32>
    %313 = tpu.matmul %312, %6, %cst_42 {dimension_numbers = #tpu.dot_dimension_numbers<[1], [0], [0], [1], [0, 0, 1, 1], [], []>} : vector<2x32xf32>, vector<32x1xf32>, vector<2x1xf32> -> vector<2x1xf32>
    %314 = vector.broadcast %7 : vector<1x1xf32> to vector<2x1xf32>
    %315 = arith.addf %313, %314 : vector<2x1xf32>
    %c0_43 = arith.constant 0 : index
    %c0_44 = arith.constant 0 : index
    %316 = vector.load %arg4[%c0_43, %c0_44] : memref<2x1xf32, #tpu.memory_space<vmem>>, vector<2x1xf32>
    tpu.vector_store %arg4[%c0_43, %c0_44], %315 {strides = array<i32>} : memref<2x1xf32, #tpu.memory_space<vmem>>, vector<2x1xf32>,
    return
  }
}

</mosaic_0001>

<bundles_post_ra>
// kernel: tpu_custom_call.1
= control target key start
LH: loop header
LB: loop body
LE: loop exit
PB: predicated region body
PF: predicated region fallthrough
CT: control target
= control target key end

     0   :  { %9 = vsyncpa [#allocation3], 0  ;;  %s3064_s15 = smov [#allocation2]   ;;  %s3482_s0 = inlined_call_operand.vmem [shape: f32[16,1], index: 0, kind: input, shape index: {}]   ;;  %s3483_s1 = inlined_call_operand.vmem [shape: f32[3,128], index: 1, kind: input, shape index: {}]   ;;  %s3484_s2 = inlined_call_operand.hbm [shape: f32[96,128], index: 2, kind: input, shape index: {}]   ;;  %s3485_s3 = inlined_call_operand.vmem [shape: f32[33,1], index: 3, kind: input, shape index: {}]   ;;  %s3486_s4 = inlined_call_operand.vmem [shape: f32[2,1], index: 4, kind: output, shape index: {}]  }
   0x1   :  { %s19_s16 = sshll.u32 %s3064_s15, 4  ;;  %s3040_s19 = scalar_lea.hbm %s3484_s2, 1536  ;;  %s20_s16 = int_to_ptr.vmem [resolvable:$true] %s19_s16 }
   0x2   :  { %p3041_p0 = scmp.ne.s32.totalorder %s3484_s2, %s3040_s19  ;;  %p3044_p1 = scmp.lt.u32.totalorder %s3040_s19, %s3484_s2 }
   0x4   :  { %p3046_p2 = pnand %p3044_p1, %p3041_p0 }
   0x6   :  { %3049 = shalt.err (!%p3046_p2)
}
   0x7   :  { %s3050_s24 = scalar_lea.vmem %s20_s16, 1536  ;;  %p3055_p4 = scmp.lt.s32.totalorder %s20_s16, %s20_s16 }
   0x8   :  { %p3051_p3 = scmp.ne.s32.totalorder %s20_s16, %s3050_s24  ;;  %p3056_p5 = scmp.lt.s32.totalorder %s3050_s24, %s3050_s24 }
   0xa   :  { %p3057_p6 = por %p3056_p5, %p3055_p4 }
   0xc   :  { %p3058_p7 = pnand %p3057_p6, %p3051_p3 }
   0xe   :  { %3061 = shalt.err (!%p3058_p7)
}
   0xf   :  { %s3065_s25 = smov 128   ;;  %s3066_s26 = smov 8  }
  0x10   :  { %25 = dma.hbm_to_vmem [thread:$0]  %s3484_s2, 1536, %s20_s16, [#allocation3], %s3065_s25, %s3065_s25, %s3066_s26  }
  0x11   :  { %3062 = dma.done.wait [#allocation3], 1536  }
  0x12   :  { %3063 = vsyncadd [#allocation3], 4294965760  ;;  %v3067_v0 = vmov 0.0|0.0   ;;  %vm3068_vm0 = vmmov 0   ;;  %v3069_v1 = vmov 0.0   ;;  %vm71_vm1 = vcmask 1040384  }
  0x13   :  { %2817 = vmatprep.subr.bf16.mxu1 %v3067_v0  ;;  %2550 = vmatprep.mubr.msk.f32.mxu1 %vm3068_vm0, %v3069_v1  ;;  %vm64_vm2 = vcmask 7168   ;;  %v34_v2 = vld [vmem:[#allocation2] sm:$0xff]  ;;  %v35_v3 = vld [vmem:[#allocation2 + $0x8] sm:$0xff]  ;;  %v36_v8 = vld [vmem:[#allocation2 + $0x10] sm:$0xff]  ;;  %v51_v16 = vlaneseq  ;;  %v3070_v21 = vmov 0.5   ;;  %s3071_s9 = smov 64  }
  0x14   :  { %v31_v4 = vld [vmem:[%s3483_s1] sm:$0x1]  ;;  %v3116_v5 = vpack.c.bf16 %v35_v3, %v34_v2  ;;  %v59_v7 = vld [vmem:[%s3482_s0 + $0x8] sm:$0xff]  ;;  %v37_v9 = vld [vmem:[#allocation2 + $0x18] sm:$0xff]  ;;  %s3072_s10 = smov 32   ;;  %vm150_vm6 = vcmask 261120  }
  0x15   :  { %2537 = vmatprep.subr.msk.mxu0 %vm71_vm1, %v31_v4  ;;  %v58_v6 = vld [vmem:[%s3482_s0] sm:$0xff]  ;;  %v3125_v10 = vpack.c.bf16 %v37_v9, %v36_v8  ;;  %v52_v20 = vand.u32 127, %v51_v16  ;;  %v43_v33 = vld [vmem:[#allocation2 + $0x48] sm:$0xff]  ;;  %v44_v34 = vld [vmem:[#allocation2 + $0x50] sm:$0xff]  ;;  %vm2373_vm7 = vcmask 1024  }
  0x16   :  { %2538 = vmatpush3.msk.msra.mxu0 %vm71_vm1, %v31_v4  ;;  %2539 = vmatprep.mubr.msk.f32.mxu0 %vm64_vm2, %v58_v6  ;;  %v2380_v11 = vld [vmem:[%s3483_s1 + $0x1] ss:$0 sm:$0xff]  ;;  %v45_v36 = vld [vmem:[#allocation2 + $0x58] sm:$0xff]  ;;  %v39_v38 = vld [vmem:[#allocation2 + $0x28] sm:$0xff] }
  0x17   :  { %2819 = vmatpush3.bf16.msra.mxu1 %v3116_v5  ;;  %2540 = vmatmul.mubr.msk.f32.vlgmr.msra.gmra.mrb[0].mxu0 %vm64_vm2, %v59_v7  ;;  %vm53_vm3 = vcmp.ge.s32.totalorder %v52_v20, 64  ;;  %vm54_vm4 = vcmp.lt.s32.totalorder %v52_v20, 96  ;;  %v42_v32 = vld [vmem:[#allocation2 + $0x40] sm:$0xff]  ;;  %v40_v40 = vld [vmem:[#allocation2 + $0x30] sm:$0xff]  ;;  %v41_v41 = vld [vmem:[#allocation2 + $0x38] sm:$0xff]  ;;  %v3160_v42 = vpack.c.bf16 %v45_v36, %v44_v34 }
  0x18   :  { %2820 = vmatprep.subr.bf16.mxu1 %v3067_v0  ;;  %2823 = vmatprep.subr.bf16.mxu0 %v3067_v0  ;;  %vm55_vm5 = vmand %vm53_vm3, %vm54_vm4  ;;  %v3155_v35 = vpack.c.bf16 %v43_v33, %v42_v32  ;;  %v38_v37 = vld [vmem:[#allocation2 + $0x20] sm:$0xff]  ;;  %v3164_v43 = vpack.c.bf16 %v41_v41, %v40_v40 }
  0x19   :  { %2561 = vmatprep.mubr.msk.f32.mxu0 %vm3068_vm0, %v3069_v1  ;;  %v3144_v22 = vsel %vm55_vm5, 1.0, %v3070_v21  ;;  %v3146_v24 = vsel %vm55_vm5, 0.0, %v3070_v21  ;;  %v3157_v39 = vpack.c.bf16 %v39_v38, %v38_v37  ;;  %v3197_v50 = vld [vmem:[%s3483_s1 + $0x2] ss:$0 sm:$0xff] }
  0x1a   :  { %2825 = vmatpush3.bf16.msra.mxu0 %v3155_v35 }
  0x1b   :  { %2822 = vmatpush3.bf16.msra.mxu1 %v3125_v10  ;;  %2826 = vmatprep.subr.bf16.mxu0 %v3067_v0 }
  0x1c   :  { %2829 = vmatprep.subr.bf16.mxu1 %v3067_v0 }
  0x1e   :  { %2551 = vmatmul.mubr.f32.vlgmr.msra.gmra.mrb[0].mxu1 %v3069_v1  ;;  %2828 = vmatpush3.bf16.msra.mxu0 %v3160_v42 }
  0x1f   :  { %2572 = vmatprep.mubr.msk.f32.mxu1 %vm3068_vm0, %v3069_v1  ;;  %2831 = vmatpush3.bf16.msra.mxu1 %v3157_v39 }
  0x20   :  { %2832 = vmatprep.subr.bf16.mxu1 %v3067_v0  ;;  %2835 = vmatprep.subr.bf16.mxu0 %v3067_v0 }
  0x21   :  { %2562 = vmatmul.mubr.f32.vlgmr.msra.gmra.mrb[2].mxu0 %v3069_v1 }
  0x22   :  { %2837 = vmatpush3.bf16.msra.mxu0 %v3116_v5  ;;  %2583 = vmatprep.mubr.msk.f32.mxu0 %vm3068_vm0, %v3069_v1 }
  0x23   :  { %2834 = vmatpush3.bf16.msra.mxu1 %v3164_v43  ;;  %2838 = vmatprep.subr.bf16.mxu0 %v3067_v0 }
  0x24   :  { %2841 = vmatprep.subr.bf16.mxu1 %v3067_v0 }
  0x26   :  { %2840 = vmatpush3.bf16.msra.mxu0 %v3125_v10 }
  0x27   :  { %2847 = vmatprep.subr.bf16.mxu0 %v3067_v0 }
  0xea   :  { %v2541_v12 = vpop.f32.mrb[0].mxu0 }
  0xeb   :  { %v3139_v13 = vadd.f32 %v2541_v12, %v2380_v11  ;;  %v141_v14 = vpop.f32.mrb[1].mxu0 }
  0xec   :  { %v3141_v15 = vadd.f32 %v2380_v11, %v141_v14 }
  0xf1   :  { %v220_v17 = vpop.f32.mrb[0].mxu1 }
  0xf2   :  { %v224_v18 = vadd.f32 %v220_v17, %v3141_v15  ;;  %v2552_v19 = vpop.f32.mrb[1].mxu1 }
  0xf4   :  { %2976 = vtanh.f32 %v224_v18  ;;  %v311_v47 = vpop.f32.mrb[2].mxu0 }
  0xf5   :  { %v2563_v48 = vpop.f32.mrb[3].mxu0 }
  0xfe   :  { %v2977_v23 = vpop.eup %2976 }
  0xff   :  { %v226_v25 = vmul.f32 %v2977_v23, %v3144_v22 }
 0x101   :  { %v227_v26 = vadd.f32 %v226_v25, %v3146_v24 }
 0x103   :  { %230 = vrot.lane.b32.xlu0 %v227_v26, %s3071_s9  ;;  %v228_v29 = vmul.f32 0.0, %v227_v26 }
 0x175   :  { %v231_v27 = vpop.permute.xlu0 %230 }
 0x176   :  { %v233_v28 = vmul.f32 %v231_v27, %v227_v26 }
 0x178   :  { %235 = vrot.lane.b32.xlu0 %v233_v28, %s3072_s10 }
 0x1ea   :  { %v236_v30 = vpop.permute.xlu0 %235 }
 0x1eb   :  { %v3152_v31 = vadd.f32 %v236_v30, %v228_v29 }
 0x1ed   :  { %2978 = vtanh.f32 %v3152_v31  ;;  %v493_v8 = vrot.slane %v3152_v31, 6 }
 0x1f7   :  { %v2979_v44 = vpop.eup %2978 }
 0x1f8   :  { %241 = vrot.lane.b32.xlu1 %v2979_v44, %s3071_s9 }
 0x26a   :  { %v242_v45 = vpop.permute.xlu1 %241 }
 0x26b   :  { %v244_v46 = vmul.f32 %v242_v45, %v227_v26 }
 0x26d   :  { %316 = vrot.lane.b32.xlu1 %v244_v46, %s3072_s10 }
 0x2df   :  { %v317_v49 = vpop.permute.xlu1 %316 }
 0x2e0   :  { %2573 = vmatmul.mubr.msk.f32.vlgmr.msra.gmra.mrb[2].mxu1 %vm150_vm6, %v317_v49  ;;  %2584 = vmatmul.mubr.msk.f32.vlgmr.msra.gmra.mrb[4].mxu0 %vm150_vm6, %v317_v49 }
 0x2e1   :  { %2843 = vmatpush3.bf16.msra.mxu1 %v3155_v35  ;;  %2849 = vmatpush3.bf16.msra.mxu0 %v3157_v39 }
 0x2e2   :  { %2844 = vmatprep.subr.bf16.mxu1 %v3067_v0  ;;  %2850 = vmatprep.subr.bf16.mxu0 %v3067_v0 }
 0x2e3   :  { %2594 = vmatprep.mubr.msk.f32.mxu1 %vm3068_vm0, %v3069_v1  ;;  %2605 = vmatprep.mubr.msk.f32.mxu0 %vm3068_vm0, %v3069_v1 }
 0x2e5   :  { %2846 = vmatpush3.bf16.msra.mxu1 %v3160_v42  ;;  %2852 = vmatpush3.bf16.msra.mxu0 %v3164_v43 }
 0x2e6   :  { %2853 = vmatprep.subr.bf16.mxu1 %v3067_v0  ;;  %2859 = vmatprep.subr.bf16.mxu0 %v3067_v0 }
 0x3b3   :  { %v386_v51 = vpop.f32.mrb[2].mxu1  ;;  %v481_v52 = vpop.f32.mrb[4].mxu0 }
 0x3b4   :  { %v387_v53 = vadd.f32 %v386_v51, %v311_v47  ;;  %v486_v54 = vrot.slane %v481_v52, 6  ;;  %v2574_v55 = vpop.f32.mrb[3].mxu1  ;;  %v2585_v56 = vpop.f32.mrb[5].mxu0 }
 0x3b6   :  { %v394_v57 = vadd.f32 %v3197_v50, %v387_v53  ;;  %v488_v58 = vadd.f32 %v486_v54, %v3141_v15 }
 0x3b8   :  { %2980 = vtanh.f32 %v394_v57 }
 0x3b9   :  { %2982 = vtanh.f32 %v488_v58 }
 0x3c2   :  { %v2981_v59 = vpop.eup %2980 }
 0x3c3   :  { %v2983_v60 = vpop.eup %2982  ;;  %v396_v61 = vmul.f32 %v2981_v59, %v3144_v22 }
 0x3c4   :  { %v490_v62 = vmul.f32 %v2983_v60, %v3144_v22 }
 0x3c5   :  { %v397_v63 = vadd.f32 %v396_v61, %v3146_v24 }
 0x3c6   :  { %v491_v2 = vadd.f32 %v490_v62, %v3146_v24 }
 0x3c7   :  { %400 = vrot.lane.b32.xlu0 %v397_v63, %s3071_s9  ;;  %v398_v9 = vmul.f32 0.0, %v397_v63 }
 0x3c8   :  { %497 = vrot.lane.b32.xlu1 %v491_v2, %s3071_s9  ;;  %v495_v11 = vmul.f32 %v493_v8, %v491_v2 }
 0x439   :  { %v401_v3 = vpop.permute.xlu0 %400 }
 0x43a   :  { %v498_v4 = vpop.permute.xlu1 %497  ;;  %v403_v6 = vmul.f32 %v401_v3, %v397_v63 }
 0x43b   :  { %v500_v7 = vmul.f32 %v498_v4, %v491_v2 }
 0x43c   :  { %405 = vrot.lane.b32.xlu0 %v403_v6, %s3072_s10 }
 0x43d   :  { %502 = vrot.lane.b32.xlu1 %v500_v7, %s3072_s10 }
 0x4ae   :  { %v406_v12 = vpop.permute.xlu0 %405 }
 0x4af   :  { %v503_v14 = vpop.permute.xlu1 %502  ;;  %v408_v16 = vadd.f32 %v406_v12, %v398_v9 }
 0x4b0   :  { %v3210_v17 = vadd.f32 %v503_v14, %v495_v11 }
 0x4b1   :  { %2984 = vtanh.f32 %v408_v16 }
 0x4b2   :  { %2986 = vtanh.f32 %v3210_v17  ;;  %v762_v57 = vrot.slane %v3210_v17, 6 }
 0x4bb   :  { %v2985_v18 = vpop.eup %2984 }
 0x4bc   :  { %v2987_v19 = vpop.eup %2986  ;;  %411 = vrot.lane.b32.xlu0 %v2985_v18, %s3071_s9 }
 0x4bd   :  { %508 = vrot.lane.b32.xlu1 %v2987_v19, %s3071_s9 }
 0x52e   :  { %v412_v20 = vpop.permute.xlu0 %411 }
 0x52f   :  { %v509_v21 = vpop.permute.xlu1 %508  ;;  %v414_v23 = vmul.f32 %v412_v20, %v397_v63 }
 0x530   :  { %v511_v25 = vmul.f32 %v509_v21, %v491_v2 }
 0x531   :  { %513 = vrot.lane.b32.xlu0 %v414_v23, %s3072_s10 }
 0x532   :  { %v588_v26 = vrot.slane %v511_v25, 2 }
 0x534   :  { %589 = vrot.lane.b32.xlu1 %v588_v26, %s3072_s10 }
 0x5a3   :  { %v514_v27 = vpop.permute.xlu0 %513 }
 0x5a4   :  { %2595 = vmatmul.mubr.msk.f32.vlgmr.msra.gmra.mrb[4].mxu1 %vm150_vm6, %v514_v27 }
 0x5a5   :  { %2855 = vmatpush3.bf16.msra.mxu1 %v3116_v5  ;;  %2616 = vmatprep.mubr.msk.f32.mxu1 %vm3068_vm0, %v3069_v1 }
 0x5a6   :  { %v590_v28 = vpop.permute.xlu1 %589  ;;  %2856 = vmatprep.subr.bf16.mxu1 %v3067_v0 }
 0x5a7   :  { %2606 = vmatmul.mubr.msk.f32.vlgmr.msra.gmra.mrb[6].mxu0 %vm150_vm6, %v590_v28 }
 0x5a8   :  { %2861 = vmatpush3.bf16.msra.mxu0 %v3155_v35  ;;  %2627 = vmatprep.mubr.msk.f32.mxu0 %vm3068_vm0, %v3069_v1 }
 0x5a9   :  { %2858 = vmatpush3.bf16.msra.mxu1 %v3125_v10  ;;  %2862 = vmatprep.subr.bf16.mxu0 %v3067_v0 }
 0x5aa   :  { %2865 = vmatprep.subr.bf16.mxu1 %v3067_v0 }
 0x5ac   :  { %2617 = vmatmul.mubr.msk.f32.vlgmr.msra.gmra.mrb[6].mxu1 %vm150_vm6, %v590_v28  ;;  %2864 = vmatpush3.bf16.msra.mxu0 %v3160_v42 }
 0x5ad   :  { %2871 = vmatprep.subr.bf16.mxu0 %v3067_v0  ;;  %2867 = vmatpush3.bf16.msra.mxu1 %v3157_v39 }
 0x5ae   :  { %2868 = vmatprep.subr.bf16.mxu1 %v3067_v0  ;;  %2638 = vmatprep.mubr.msk.f32.mxu1 %vm3068_vm0, %v3069_v1 }
 0x5b1   :  { %2870 = vmatpush3.bf16.msra.mxu1 %v3164_v43 }
 0x5b2   :  { %2877 = vmatprep.subr.bf16.mxu1 %v3067_v0 }
 0x677   :  { %v583_v29 = vpop.f32.mrb[4].mxu1 }
 0x678   :  { %v2596_v30 = vpop.f32.mrb[5].mxu1 }
 0x67a   :  { %v659_v31 = vpop.f32.mrb[6].mxu0 }
 0x67b   :  { %v660_v32 = vadd.f32 %v659_v31, %v583_v29  ;;  %v2607_v33 = vpop.f32.mrb[7].mxu0 }
 0x67d   :  { %v663_v34 = vadd.f32 %v3197_v50, %v660_v32 }
 0x67f   :  { %2988 = vtanh.f32 %v663_v34  ;;  %v750_v36 = vpop.f32.mrb[6].mxu1 }
 0x680   :  { %v755_v37 = vrot.slane %v750_v36, 4  ;;  %v2618_v38 = vpop.f32.mrb[7].mxu1 }
 0x682   :  { %v757_v40 = vadd.f32 %v755_v37, %v3141_v15 }
 0x684   :  { %2990 = vtanh.f32 %v757_v40 }
 0x689   :  { %v2989_v41 = vpop.eup %2988 }
 0x68a   :  { %v665_v44 = vmul.f32 %v2989_v41, %v3144_v22 }
 0x68c   :  { %v666_v45 = vadd.f32 %v665_v44, %v3146_v24 }
 0x68e   :  { %v2991_v46 = vpop.eup %2990  ;;  %669 = vrot.lane.b32.xlu0 %v666_v45, %s3071_s9  ;;  %v667_v54 = vmul.f32 %v666_v45, %v408_v16 }
 0x68f   :  { %v759_v47 = vmul.f32 %v2991_v46, %v3144_v22 }
 0x691   :  { %v760_v48 = vadd.f32 %v759_v47, %v3146_v24 }
 0x693   :  { %766 = vrot.lane.b32.xlu1 %v760_v48, %s3071_s9  ;;  %v764_v58 = vmul.f32 %v762_v57, %v760_v48 }
 0x700   :  { %v670_v49 = vpop.permute.xlu0 %669 }
 0x701   :  { %v672_v51 = vmul.f32 %v670_v49, %v666_v45 }
 0x703   :  { %674 = vrot.lane.b32.xlu0 %v672_v51, %s3072_s10 }
 0x705   :  { %v767_v52 = vpop.permute.xlu1 %766 }
 0x706   :  { %v769_v53 = vmul.f32 %v767_v52, %v760_v48 }
 0x708   :  { %771 = vrot.lane.b32.xlu1 %v769_v53, %s3072_s10 }
 0x775   :  { %v675_v55 = vpop.permute.xlu0 %674 }
 0x776   :  { %v3248_v56 = vadd.f32 %v675_v55, %v667_v54 }
 0x778   :  { %2992 = vtanh.f32 %v3248_v56 }
 0x77a   :  { %v772_v59 = vpop.permute.xlu1 %771 }
 0x77b   :  { %v774_v60 = vadd.f32 %v772_v59, %v764_v58 }
 0x77d   :  { %2994 = vtanh.f32 %v774_v60  ;;  %v1031_v33 = vrot.slane %v774_v60, 6 }
 0x782   :  { %v2993_v61 = vpop.eup %2992 }
 0x783   :  { %680 = vrot.lane.b32.xlu0 %v2993_v61, %s3071_s9 }
 0x787   :  { %v2995_v62 = vpop.eup %2994 }
 0x788   :  { %777 = vrot.lane.b32.xlu1 %v2995_v62, %s3071_s9 }
 0x7f5   :  { %v681_v63 = vpop.permute.xlu0 %680 }
 0x7f6   :  { %v683_v2 = vmul.f32 %v681_v63, %v666_v45 }
 0x7f8   :  { %782 = vrot.lane.b32.xlu0 %v683_v2, %s3072_s10 }
 0x7fa   :  { %v778_v3 = vpop.permute.xlu1 %777 }
 0x7fb   :  { %v780_v4 = vmul.f32 %v778_v3, %v760_v48 }
 0x7fd   :  { %v857_v6 = vrot.slane %v780_v4, 4 }
 0x7ff   :  { %858 = vrot.lane.b32.xlu1 %v857_v6, %s3072_s10 }
 0x86a   :  { %v783_v7 = vpop.permute.xlu0 %782 }
 0x86b   :  { %2628 = vmatmul.mubr.msk.f32.vlgmr.msra.gmra.mrb[8].mxu0 %vm150_vm6, %v783_v7 }
 0x86c   :  { %2873 = vmatpush3.bf16.msra.mxu0 %v3116_v5  ;;  %2649 = vmatprep.mubr.msk.f32.mxu0 %vm3068_vm0, %v3069_v1 }
 0x86d   :  { %2874 = vmatprep.subr.bf16.mxu0 %v3067_v0 }
 0x870   :  { %2876 = vmatpush3.bf16.msra.mxu0 %v3125_v10 }
 0x871   :  { %v859_v8 = vpop.permute.xlu1 %858  ;;  %2883 = vmatprep.subr.bf16.mxu0 %v3067_v0 }
 0x872   :  { %2639 = vmatmul.mubr.msk.f32.vlgmr.msra.gmra.mrb[8].mxu1 %vm150_vm6, %v859_v8 }
 0x873   :  { %2650 = vmatmul.mubr.msk.f32.vlgmr.msra.gmra.mrb[10].mxu0 %vm150_vm6, %v859_v8  ;;  %2879 = vmatpush3.bf16.msra.mxu1 %v3155_v35 }
 0x874   :  { %2880 = vmatprep.subr.bf16.mxu1 %v3067_v0  ;;  %2885 = vmatpush3.bf16.msra.mxu0 %v3157_v39 }
 0x875   :  { %2886 = vmatprep.subr.bf16.mxu0 %v3067_v0  ;;  %2660 = vmatprep.mubr.msk.f32.mxu1 %vm3068_vm0, %v3069_v1 }
 0x876   :  { %2671 = vmatprep.mubr.msk.f32.mxu0 %vm3068_vm0, %v3069_v1 }
 0x877   :  { %2882 = vmatpush3.bf16.msra.mxu1 %v3160_v42 }
 0x878   :  { %2888 = vmatpush3.bf16.msra.mxu0 %v3164_v43  ;;  %2889 = vmatprep.subr.bf16.mxu1 %v3067_v0 }
 0x879   :  { %2895 = vmatprep.subr.bf16.mxu0 %v3067_v0 }
 0x93e   :  { %v852_v9 = vpop.f32.mrb[8].mxu0 }
 0x93f   :  { %v2629_v11 = vpop.f32.mrb[9].mxu0 }
 0x945   :  { %v928_v12 = vpop.f32.mrb[8].mxu1 }
 0x946   :  { %v929_v14 = vadd.f32 %v928_v12, %v852_v9  ;;  %v1019_v16 = vpop.f32.mrb[10].mxu0  ;;  %v2640_v17 = vpop.f32.mrb[9].mxu1 }
 0x947   :  { %v1024_v18 = vrot.slane %v1019_v16, 2  ;;  %v2651_v19 = vpop.f32.mrb[11].mxu0 }
 0x948   :  { %v932_v20 = vadd.f32 %v3197_v50, %v929_v14 }
 0x949   :  { %v1026_v21 = vadd.f32 %v1024_v18, %v3141_v15 }
 0x94a   :  { %2996 = vtanh.f32 %v932_v20 }
 0x94b   :  { %2998 = vtanh.f32 %v1026_v21 }
 0x954   :  { %v2997_v23 = vpop.eup %2996 }
 0x955   :  { %v2999_v25 = vpop.eup %2998  ;;  %v934_v26 = vmul.f32 %v2997_v23, %v3144_v22 }
 0x956   :  { %v1028_v27 = vmul.f32 %v2999_v25, %v3144_v22 }
 0x957   :  { %v935_v28 = vadd.f32 %v934_v26, %v3146_v24 }
 0x958   :  { %v1029_v29 = vadd.f32 %v1028_v27, %v3146_v24 }
 0x959   :  { %938 = vrot.lane.b32.xlu1 %v935_v28, %s3071_s9  ;;  %v936_v34 = vmul.f32 %v935_v28, %v3248_v56 }
 0x95a   :  { %1035 = vrot.lane.b32.xlu0 %v1029_v29, %s3071_s9  ;;  %v1033_v36 = vmul.f32 %v1031_v33, %v1029_v29 }
 0x9cb   :  { %v939_v30 = vpop.permute.xlu1 %938 }
 0x9cc   :  { %v1036_v31 = vpop.permute.xlu0 %1035  ;;  %v941_v32 = vmul.f32 %v939_v30, %v935_v28 }
 0x9cd   :  { %v1038_v15 = vmul.f32 %v1036_v31, %v1029_v29 }
 0x9ce   :  { %943 = vrot.lane.b32.xlu1 %v941_v32, %s3072_s10 }
 0x9cf   :  { %1040 = vrot.lane.b32.xlu0 %v1038_v15, %s3072_s10 }
 0xa40   :  { %v944_v37 = vpop.permute.xlu1 %943 }
 0xa41   :  { %v1041_v38 = vpop.permute.xlu0 %1040  ;;  %v946_v40 = vadd.f32 %v944_v37, %v936_v34 }
 0xa42   :  { %v3288_v41 = vadd.f32 %v1041_v38, %v1033_v36 }
 0xa43   :  { %3000 = vtanh.f32 %v946_v40 }
 0xa44   :  { %3002 = vtanh.f32 %v3288_v41  ;;  %v1297_v16 = vrot.slane %v3288_v41, 6 }
 0xa4d   :  { %v3001_v44 = vpop.eup %3000 }
 0xa4e   :  { %v3003_v45 = vpop.eup %3002  ;;  %949 = vrot.lane.b32.xlu1 %v3001_v44, %s3071_s9 }
 0xa4f   :  { %1046 = vrot.lane.b32.xlu0 %v3003_v45, %s3071_s9 }
 0xac0   :  { %v950_v46 = vpop.permute.xlu1 %949 }
 0xac1   :  { %v1047_v47 = vpop.permute.xlu0 %1046  ;;  %v952_v48 = vmul.f32 %v950_v46, %v935_v28 }
 0xac2   :  { %v1049_v49 = vmul.f32 %v1047_v47, %v1029_v29 }
 0xac3   :  { %1051 = vrot.lane.b32.xlu0 %v952_v48, %s3072_s10 }
 0xac4   :  { %v1126_v51 = vrot.slane %v1049_v49, 6 }
 0xac6   :  { %1127 = vrot.lane.b32.xlu1 %v1126_v51, %s3072_s10 }
 0xb35   :  { %v1052_v52 = vpop.permute.xlu0 %1051 }
 0xb36   :  { %2661 = vmatmul.mubr.msk.f32.vlgmr.msra.gmra.mrb[10].mxu1 %vm150_vm6, %v1052_v52 }
 0xb37   :  { %2891 = vmatpush3.bf16.msra.mxu1 %v3116_v5  ;;  %2682 = vmatprep.mubr.msk.f32.mxu1 %vm3068_vm0, %v3069_v1 }
 0xb38   :  { %v1128_v53 = vpop.permute.xlu1 %1127  ;;  %2892 = vmatprep.subr.bf16.mxu1 %v3067_v0 }
 0xb39   :  { %2672 = vmatmul.mubr.msk.f32.vlgmr.msra.gmra.mrb[12].mxu0 %vm150_vm6, %v1128_v53 }
 0xb3a   :  { %2897 = vmatpush3.bf16.msra.mxu0 %v3155_v35  ;;  %2693 = vmatprep.mubr.msk.f32.mxu0 %vm3068_vm0, %v3069_v1 }
 0xb3b   :  { %2894 = vmatpush3.bf16.msra.mxu1 %v3125_v10  ;;  %2898 = vmatprep.subr.bf16.mxu0 %v3067_v0 }
 0xb3c   :  { %2901 = vmatprep.subr.bf16.mxu1 %v3067_v0 }
 0xb3e   :  { %2683 = vmatmul.mubr.msk.f32.vlgmr.msra.gmra.mrb[12].mxu1 %vm150_vm6, %v1128_v53  ;;  %2900 = vmatpush3.bf16.msra.mxu0 %v3160_v42 }
 0xb3f   :  { %2903 = vmatpush3.bf16.msra.mxu1 %v3157_v39  ;;  %2907 = vmatprep.subr.bf16.mxu0 %v3067_v0 }
 0xb40   :  { %2904 = vmatprep.subr.bf16.mxu1 %v3067_v0  ;;  %2704 = vmatprep.mubr.msk.f32.mxu1 %vm3068_vm0, %v3069_v1 }
 0xb43   :  { %2906 = vmatpush3.bf16.msra.mxu1 %v3164_v43 }
 0xb44   :  { %2913 = vmatprep.subr.bf16.mxu1 %v3067_v0 }
 0xc09   :  { %v1121_v54 = vpop.f32.mrb[10].mxu1 }
 0xc0a   :  { %v2662_v55 = vpop.f32.mrb[11].mxu1 }
 0xc0c   :  { %v1197_v56 = vpop.f32.mrb[12].mxu0 }
 0xc0d   :  { %v1198_v57 = vadd.f32 %v1197_v56, %v1121_v54  ;;  %v2673_v58 = vpop.f32.mrb[13].mxu0 }
 0xc0f   :  { %v1201_v59 = vadd.f32 %v3197_v50, %v1198_v57 }
 0xc11   :  { %3004 = vtanh.f32 %v1201_v59  ;;  %v1288_v60 = vpop.f32.mrb[12].mxu1 }
 0xc12   :  { %v1292_v61 = vadd.f32 %v1288_v60, %v3139_v13  ;;  %v2684_v62 = vpop.f32.mrb[13].mxu1 }
 0xc14   :  { %3006 = vtanh.f32 %v1292_v61 }
 0xc1b   :  { %v3005_v63 = vpop.eup %3004 }
 0xc1c   :  { %v1203_v2 = vmul.f32 %v3005_v63, %v3144_v22 }
 0xc1e   :  { %v3007_v3 = vpop.eup %3006  ;;  %v1204_v4 = vadd.f32 %v1203_v2, %v3146_v24 }
 0xc1f   :  { %v1294_v6 = vmul.f32 %v3007_v3, %v3144_v22 }
 0xc20   :  { %1207 = vrot.lane.b32.xlu0 %v1204_v4, %s3071_s9  ;;  %v1205_v14 = vmul.f32 %v1204_v4, %v946_v40 }
 0xc21   :  { %v1295_v7 = vadd.f32 %v1294_v6, %v3146_v24 }
 0xc23   :  { %1301 = vrot.lane.b32.xlu1 %v1295_v7, %s3071_s9  ;;  %v1299_v19 = vmul.f32 %v1297_v16, %v1295_v7 }
 0xc92   :  { %v1208_v8 = vpop.permute.xlu0 %1207 }
 0xc93   :  { %v1210_v9 = vmul.f32 %v1208_v8, %v1204_v4 }
 0xc95   :  { %1212 = vrot.lane.b32.xlu0 %v1210_v9, %s3072_s10  ;;  %v1302_v11 = vpop.permute.xlu1 %1301 }
 0xc96   :  { %v1304_v12 = vmul.f32 %v1302_v11, %v1295_v7 }
 0xc98   :  { %1306 = vrot.lane.b32.xlu1 %v1304_v12, %s3072_s10 }
 0xd07   :  { %v1213_v17 = vpop.permute.xlu0 %1212 }
 0xd08   :  { %v1215_v18 = vadd.f32 %v1213_v17, %v1205_v14 }
 0xd0a   :  { %3008 = vtanh.f32 %v1215_v18  ;;  %v1307_v20 = vpop.permute.xlu1 %1306 }
 0xd0b   :  { %v3327_v21 = vadd.f32 %v1307_v20, %v1299_v19 }
 0xd0d   :  { %3010 = vtanh.f32 %v3327_v21  ;;  %v1565_v59 = vrot.slane %v3327_v21, 6 }
 0xd14   :  { %v3009_v23 = vpop.eup %3008 }
 0xd15   :  { %1218 = vrot.lane.b32.xlu0 %v3009_v23, %s3071_s9 }
 0xd17   :  { %v3011_v25 = vpop.eup %3010 }
 0xd18   :  { %1312 = vrot.lane.b32.xlu1 %v3011_v25, %s3071_s9 }
 0xd87   :  { %v1219_v26 = vpop.permute.xlu0 %1218 }
 0xd88   :  { %v1221_v27 = vmul.f32 %v1219_v26, %v1204_v4 }
 0xd8a   :  { %1317 = vrot.lane.b32.xlu0 %v1221_v27, %s3072_s10  ;;  %v1313_v28 = vpop.permute.xlu1 %1312 }
 0xd8b   :  { %v1315_v29 = vmul.f32 %v1313_v28, %v1295_v7 }
 0xd8d   :  { %1392 = vrot.lane.b32.xlu1 %v1315_v29, %s3072_s10 }
 0xdfc   :  { %v1318_v30 = vpop.permute.xlu0 %1317 }
 0xdfd   :  { %2694 = vmatmul.mubr.msk.f32.vlgmr.msra.gmra.mrb[14].mxu0 %vm150_vm6, %v1318_v30 }
 0xdfe   :  { %2909 = vmatpush3.bf16.msra.mxu0 %v3116_v5  ;;  %2715 = vmatprep.mubr.msk.f32.mxu0 %vm3068_vm0, %v3069_v1 }
 0xdff   :  { %v1393_v31 = vpop.permute.xlu1 %1392  ;;  %2910 = vmatprep.subr.bf16.mxu0 %v3067_v0 }
 0xe00   :  { %2705 = vmatmul.mubr.msk.f32.vlgmr.msra.gmra.mrb[14].mxu1 %vm150_vm6, %v1393_v31 }
 0xe01   :  { %2915 = vmatpush3.bf16.msra.mxu1 %v3155_v35  ;;  %2726 = vmatprep.mubr.msk.f32.mxu1 %vm3068_vm0, %v3069_v1 }
 0xe02   :  { %2912 = vmatpush3.bf16.msra.mxu0 %v3125_v10  ;;  %2916 = vmatprep.subr.bf16.mxu1 %v3067_v0 }
 0xe03   :  { %2919 = vmatprep.subr.bf16.mxu0 %v3067_v0 }
 0xe05   :  { %2716 = vmatmul.mubr.msk.f32.vlgmr.msra.gmra.mrb[16].mxu0 %vm150_vm6, %v1393_v31  ;;  %2918 = vmatpush3.bf16.msra.mxu1 %v3160_v42 }
 0xe06   :  { %2921 = vmatpush3.bf16.msra.mxu0 %v3157_v39  ;;  %2925 = vmatprep.subr.bf16.mxu1 %v3067_v0 }
 0xe07   :  { %2922 = vmatprep.subr.bf16.mxu0 %v3067_v0  ;;  %2737 = vmatprep.mubr.msk.f32.mxu0 %vm3068_vm0, %v3069_v1 }
 0xe0a   :  { %2924 = vmatpush3.bf16.msra.mxu0 %v3164_v43 }
 0xe0b   :  { %2931 = vmatprep.subr.bf16.mxu0 %v3067_v0 }
 0xed0   :  { %v1387_v32 = vpop.f32.mrb[14].mxu0 }
 0xed1   :  { %v2695_v15 = vpop.f32.mrb[15].mxu0 }
 0xed3   :  { %v1462_v33 = vpop.f32.mrb[14].mxu1 }
 0xed4   :  { %v1463_v34 = vadd.f32 %v1462_v33, %v1387_v32  ;;  %v2706_v36 = vpop.f32.mrb[15].mxu1 }
 0xed6   :  { %v1466_v37 = vadd.f32 %v3197_v50, %v1463_v34 }
 0xed8   :  { %3012 = vtanh.f32 %v1466_v37  ;;  %v1553_v38 = vpop.f32.mrb[16].mxu0 }
 0xed9   :  { %v1558_v40 = vrot.slane %v1553_v38, 6  ;;  %v2717_v41 = vpop.f32.mrb[17].mxu0 }
 0xedb   :  { %v1560_v44 = vadd.f32 %v1558_v40, %v3139_v13 }
 0xedd   :  { %3014 = vtanh.f32 %v1560_v44 }
 0xee2   :  { %v3013_v45 = vpop.eup %3012 }
 0xee3   :  { %v1468_v46 = vmul.f32 %v3013_v45, %v3144_v22 }
 0xee5   :  { %v1469_v47 = vadd.f32 %v1468_v46, %v3146_v24 }
 0xee7   :  { %v3015_v48 = vpop.eup %3014  ;;  %1472 = vrot.lane.b32.xlu0 %v1469_v47, %s3071_s9  ;;  %v1470_v56 = vmul.f32 %v1469_v47, %v1215_v18 }
 0xee8   :  { %v1562_v49 = vmul.f32 %v3015_v48, %v3144_v22 }
 0xeea   :  { %v1563_v51 = vadd.f32 %v1562_v49, %v3146_v24 }
 0xeec   :  { %1569 = vrot.lane.b32.xlu1 %v1563_v51, %s3071_s9  ;;  %v1567_v60 = vmul.f32 %v1565_v59, %v1563_v51 }
 0xf59   :  { %v1473_v52 = vpop.permute.xlu0 %1472 }
 0xf5a   :  { %v1475_v53 = vmul.f32 %v1473_v52, %v1469_v47 }
 0xf5c   :  { %1477 = vrot.lane.b32.xlu0 %v1475_v53, %s3072_s10 }
 0xf5e   :  { %v1570_v54 = vpop.permute.xlu1 %1569 }
 0xf5f   :  { %v1572_v55 = vmul.f32 %v1570_v54, %v1563_v51 }
 0xf61   :  { %1574 = vrot.lane.b32.xlu1 %v1572_v55, %s3072_s10 }
 0xfce   :  { %v1478_v57 = vpop.permute.xlu0 %1477 }
 0xfcf   :  { %v3365_v58 = vadd.f32 %v1478_v57, %v1470_v56 }
 0xfd1   :  { %3016 = vtanh.f32 %v3365_v58 }
 0xfd3   :  { %v1575_v61 = vpop.permute.xlu1 %1574 }
 0xfd4   :  { %v3369_v62 = vadd.f32 %v1575_v61, %v1567_v60 }
 0xfd6   :  { %3018 = vtanh.f32 %v3369_v62  ;;  %v1834_v36 = vrot.slane %v3369_v62, 6 }
 0xfdb   :  { %v3017_v63 = vpop.eup %3016 }
 0xfdc   :  { %1483 = vrot.lane.b32.xlu0 %v3017_v63, %s3071_s9 }
 0xfe0   :  { %v3019_v2 = vpop.eup %3018 }
 0xfe1   :  { %1580 = vrot.lane.b32.xlu1 %v3019_v2, %s3071_s9 }
0x104e   :  { %v1484_v3 = vpop.permute.xlu0 %1483 }
0x104f   :  { %v1486_v4 = vmul.f32 %v1484_v3, %v1469_v47 }
0x1051   :  { %1585 = vrot.lane.b32.xlu0 %v1486_v4, %s3072_s10 }
0x1053   :  { %v1581_v6 = vpop.permute.xlu1 %1580 }
0x1054   :  { %v1583_v7 = vmul.f32 %v1581_v6, %v1563_v51 }
0x1056   :  { %v1660_v8 = vrot.slane %v1583_v7, 2 }
0x1058   :  { %1661 = vrot.lane.b32.xlu1 %v1660_v8, %s3072_s10 }
0x10c3   :  { %v1586_v9 = vpop.permute.xlu0 %1585 }
0x10c4   :  { %2727 = vmatmul.mubr.msk.f32.vlgmr.msra.gmra.mrb[16].mxu1 %vm150_vm6, %v1586_v9 }
0x10c5   :  { %2927 = vmatpush3.bf16.msra.mxu1 %v3116_v5  ;;  %2748 = vmatprep.mubr.msk.f32.mxu1 %vm3068_vm0, %v3069_v1 }
0x10c6   :  { %2928 = vmatprep.subr.bf16.mxu1 %v3067_v0 }
0x10c9   :  { %2930 = vmatpush3.bf16.msra.mxu1 %v3125_v10 }
0x10ca   :  { %v1662_v11 = vpop.permute.xlu1 %1661  ;;  %2937 = vmatprep.subr.bf16.mxu1 %v3067_v0 }
0x10cb   :  { %2738 = vmatmul.mubr.msk.f32.vlgmr.msra.gmra.mrb[18].mxu0 %vm150_vm6, %v1662_v11 }
0x10cc   :  { %2749 = vmatmul.mubr.msk.f32.vlgmr.msra.gmra.mrb[18].mxu1 %vm150_vm6, %v1662_v11  ;;  %2933 = vmatpush3.bf16.msra.mxu0 %v3155_v35 }
0x10cd   :  { %2934 = vmatprep.subr.bf16.mxu0 %v3067_v0  ;;  %2939 = vmatpush3.bf16.msra.mxu1 %v3157_v39 }
0x10ce   :  { %2759 = vmatprep.mubr.msk.f32.mxu0 %vm3068_vm0, %v3069_v1  ;;  %2940 = vmatprep.subr.bf16.mxu1 %v3067_v0 }
0x10cf   :  { %2770 = vmatprep.mubr.msk.f32.mxu1 %vm3068_vm0, %v3069_v1 }
0x10d0   :  { %2936 = vmatpush3.bf16.msra.mxu0 %v3160_v42 }
0x10d1   :  { %2943 = vmatprep.subr.bf16.mxu0 %v3067_v0  ;;  %2942 = vmatpush3.bf16.msra.mxu1 %v3164_v43 }
0x10d2   :  { %2949 = vmatprep.subr.bf16.mxu1 %v3067_v0 }
0x1197   :  { %v1655_v12 = vpop.f32.mrb[16].mxu1 }
0x1198   :  { %v2728_v14 = vpop.f32.mrb[17].mxu1 }
0x119e   :  { %v1731_v16 = vpop.f32.mrb[18].mxu0 }
0x119f   :  { %v1732_v17 = vadd.f32 %v1731_v16, %v1655_v12  ;;  %v2739_v18 = vpop.f32.mrb[19].mxu0  ;;  %v1822_v19 = vpop.f32.mrb[18].mxu1 }
0x11a0   :  { %v1827_v20 = vrot.slane %v1822_v19, 4  ;;  %v2750_v21 = vpop.f32.mrb[19].mxu1 }
0x11a1   :  { %v1735_v23 = vadd.f32 %v3197_v50, %v1732_v17 }
0x11a2   :  { %v1829_v25 = vadd.f32 %v1827_v20, %v3139_v13 }
0x11a3   :  { %3020 = vtanh.f32 %v1735_v23 }
0x11a4   :  { %3022 = vtanh.f32 %v1829_v25 }
0x11ad   :  { %v3021_v26 = vpop.eup %3020 }
0x11ae   :  { %v3023_v27 = vpop.eup %3022  ;;  %v1737_v28 = vmul.f32 %v3021_v26, %v3144_v22 }
0x11af   :  { %v1831_v29 = vmul.f32 %v3023_v27, %v3144_v22 }
0x11b0   :  { %v1738_v30 = vadd.f32 %v1737_v28, %v3146_v24 }
0x11b1   :  { %v1832_v31 = vadd.f32 %v1831_v29, %v3146_v24 }
0x11b2   :  { %1741 = vrot.lane.b32.xlu0 %v1738_v30, %s3071_s9  ;;  %v1739_v37 = vmul.f32 %v1738_v30, %v3365_v58 }
0x11b3   :  { %1838 = vrot.lane.b32.xlu1 %v1832_v31, %s3071_s9  ;;  %v1836_v40 = vmul.f32 %v1834_v36, %v1832_v31 }
0x1224   :  { %v1742_v32 = vpop.permute.xlu0 %1741 }
0x1225   :  { %v1744_v15 = vmul.f32 %v1742_v32, %v1738_v30  ;;  %v1839_v33 = vpop.permute.xlu1 %1838 }
0x1226   :  { %v1841_v34 = vmul.f32 %v1839_v33, %v1832_v31 }
0x1227   :  { %1746 = vrot.lane.b32.xlu0 %v1744_v15, %s3072_s10 }
0x1228   :  { %1843 = vrot.lane.b32.xlu1 %v1841_v34, %s3072_s10 }
0x1299   :  { %v1747_v38 = vpop.permute.xlu0 %1746 }
0x129a   :  { %v1749_v41 = vadd.f32 %v1747_v38, %v1739_v37  ;;  %v1844_v44 = vpop.permute.xlu1 %1843 }
0x129b   :  { %v3409_v45 = vadd.f32 %v1844_v44, %v1836_v40 }
0x129c   :  { %3024 = vtanh.f32 %v1749_v41 }
0x129d   :  { %3026 = vtanh.f32 %v3409_v45  ;;  %v2103_v12 = vrot.slane %v3409_v45, 6 }
0x12a6   :  { %v3025_v46 = vpop.eup %3024 }
0x12a7   :  { %v3027_v47 = vpop.eup %3026  ;;  %1752 = vrot.lane.b32.xlu0 %v3025_v46, %s3071_s9  ;;  %v49_v46 = vld [vmem:[%s3485_s3 + $0x18] sm:$0xff] }
0x12a8   :  { %1849 = vrot.lane.b32.xlu1 %v3027_v47, %s3071_s9 }
0x1319   :  { %v1753_v48 = vpop.permute.xlu0 %1752 }
0x131a   :  { %v1755_v49 = vmul.f32 %v1753_v48, %v1738_v30  ;;  %v1850_v51 = vpop.permute.xlu1 %1849 }
0x131b   :  { %v1852_v52 = vmul.f32 %v1850_v51, %v1832_v31 }
0x131c   :  { %1854 = vrot.lane.b32.xlu0 %v1755_v49, %s3072_s10 }
0x131d   :  { %v1929_v53 = vrot.slane %v1852_v52, 4 }
0x131f   :  { %1930 = vrot.lane.b32.xlu1 %v1929_v53, %s3072_s10  ;;  %v2407_v53 = vld [vmem:[%s3485_s3 + $0x20] ss:$0 sm:$0xff] }
0x138e   :  { %v1855_v54 = vpop.permute.xlu0 %1854 }
0x138f   :  { %2760 = vmatmul.mubr.msk.f32.vlgmr.msra.gmra.mrb[20].mxu0 %vm150_vm6, %v1855_v54 }
0x1390   :  { %2945 = vmatpush3.bf16.msra.mxu0 %v3116_v5  ;;  %2781 = vmatprep.mubr.msk.f32.mxu0 %vm3068_vm0, %v3069_v1 }
0x1391   :  { %v1931_v55 = vpop.permute.xlu1 %1930  ;;  %2946 = vmatprep.subr.bf16.mxu0 %v3067_v0 }
0x1392   :  { %2771 = vmatmul.mubr.msk.f32.vlgmr.msra.gmra.mrb[20].mxu1 %vm150_vm6, %v1931_v55 }
0x1393   :  { %2951 = vmatpush3.bf16.msra.mxu1 %v3155_v35  ;;  %2792 = vmatprep.mubr.msk.f32.mxu1 %vm3068_vm0, %v3069_v1 }
0x1394   :  { %2948 = vmatpush3.bf16.msra.mxu0 %v3125_v10  ;;  %2952 = vmatprep.subr.bf16.mxu1 %v3067_v0 }
0x1395   :  { %2955 = vmatprep.subr.bf16.mxu0 %v3067_v0 }
0x1397   :  { %2782 = vmatmul.mubr.msk.f32.vlgmr.msra.gmra.mrb[22].mxu0 %vm150_vm6, %v1931_v55  ;;  %2954 = vmatpush3.bf16.msra.mxu1 %v3160_v42 }
0x1398   :  { %2957 = vmatpush3.bf16.msra.mxu0 %v3157_v39  ;;  %2803 = vmatprep.mubr.msk.f32.mxu0 %vm3068_vm0, %v3069_v1 }
0x1399   :  { %2958 = vmatprep.subr.bf16.mxu0 %v3067_v0  ;;  %2961 = vmatprep.subr.bf16.mxu1 %v3067_v0 }
0x139c   :  { %2960 = vmatpush3.bf16.msra.mxu0 %v3164_v43 }
0x1462   :  { %v1924_v5 = vpop.f32.mrb[20].mxu0 }
0x1463   :  { %v2761_v10 = vpop.f32.mrb[21].mxu0 }
0x1465   :  { %v2000_v35 = vpop.f32.mrb[20].mxu1 }
0x1466   :  { %v2001_v56 = vadd.f32 %v2000_v35, %v1924_v5  ;;  %v2772_v57 = vpop.f32.mrb[21].mxu1 }
0x1468   :  { %v2004_v58 = vadd.f32 %v3197_v50, %v2001_v56 }
0x146a   :  { %3028 = vtanh.f32 %v2004_v58  ;;  %v2091_v42 = vpop.f32.mrb[22].mxu0 }
0x146b   :  { %v2096_v59 = vrot.slane %v2091_v42, 2  ;;  %v2783_v39 = vpop.f32.mrb[23].mxu0 }
0x146d   :  { %v2098_v60 = vadd.f32 %v2096_v59, %v3139_v13 }
0x146f   :  { %3030 = vtanh.f32 %v2098_v60 }
0x1474   :  { %v3029_v61 = vpop.eup %3028 }
0x1475   :  { %v2006_v62 = vmul.f32 %v3029_v61, %v3144_v22 }
0x1477   :  { %v2007_v63 = vadd.f32 %v2006_v62, %v3146_v24 }
0x1479   :  { %v3031_v43 = vpop.eup %3030  ;;  %2010 = vrot.lane.b32.xlu1 %v2007_v63, %s3071_s9  ;;  %v2008_v8 = vmul.f32 %v2007_v63, %v1749_v41 }
0x147a   :  { %v2100_v2 = vmul.f32 %v3031_v43, %v3144_v22 }
0x147c   :  { %v2101_v3 = vadd.f32 %v2100_v2, %v3146_v24 }
0x147e   :  { %2107 = vrot.lane.b32.xlu0 %v2101_v3, %s3071_s9  ;;  %v2105_v14 = vmul.f32 %v2103_v12, %v2101_v3 }
0x14eb   :  { %v2011_v4 = vpop.permute.xlu1 %2010 }
0x14ec   :  { %v2013_v6 = vmul.f32 %v2011_v4, %v2007_v63 }
0x14ee   :  { %2015 = vrot.lane.b32.xlu1 %v2013_v6, %s3072_s10 }
0x14f0   :  { %v2108_v13 = vpop.permute.xlu0 %2107 }
0x14f1   :  { %v2110_v7 = vmul.f32 %v2108_v13, %v2101_v3 }
0x14f3   :  { %2112 = vrot.lane.b32.xlu0 %v2110_v7, %s3072_s10 }
0x1560   :  { %v2016_v9 = vpop.permute.xlu1 %2015 }
0x1561   :  { %v2018_v11 = vadd.f32 %v2016_v9, %v2008_v8 }
0x1563   :  { %3032 = vtanh.f32 %v2018_v11 }
0x1565   :  { %v2113_v16 = vpop.permute.xlu0 %2112 }
0x1566   :  { %v2115_v17 = vadd.f32 %v2113_v16, %v2105_v14 }
0x1568   :  { %3034 = vtanh.f32 %v2115_v17 }
0x156d   :  { %v3033_v18 = vpop.eup %3032 }
0x156e   :  { %2021 = vrot.lane.b32.xlu1 %v3033_v18, %s3071_s9 }
0x1572   :  { %v3035_v19 = vpop.eup %3034 }
0x1573   :  { %2118 = vrot.lane.b32.xlu0 %v3035_v19, %s3071_s9 }
0x15e0   :  { %v2022_v20 = vpop.permute.xlu1 %2021 }
0x15e1   :  { %v2024_v21 = vmul.f32 %v2022_v20, %v2007_v63 }
0x15e3   :  { %2123 = vrot.lane.b32.xlu0 %v2024_v21, %s3072_s10 }
0x15e5   :  { %v2119_v23 = vpop.permute.xlu0 %2118 }
0x15e6   :  { %v2121_v25 = vmul.f32 %v2119_v23, %v2101_v3 }
0x15e8   :  { %v2198_v26 = vrot.slane %v2121_v25, 6 }
0x15ea   :  { %2199 = vrot.lane.b32.xlu1 %v2198_v26, %s3072_s10 }
0x1655   :  { %v2124_v27 = vpop.permute.xlu0 %2123 }
0x1656   :  { %2793 = vmatmul.mubr.msk.f32.vlgmr.msra.gmra.mrb[22].mxu1 %vm150_vm6, %v2124_v27 }
0x1657   :  { %2814 = vmatprep.mubr.msk.f32.mxu1 %vm3068_vm0, %v3069_v1 }
0x165c   :  { %v2200_v28 = vpop.permute.xlu1 %2199 }
0x165d   :  { %2804 = vmatmul.mubr.msk.f32.vlgmr.msra.gmra.mrb[24].mxu0 %vm150_vm6, %v2200_v28 }
0x1729   :  { %v2193_v29 = vpop.f32.mrb[22].mxu1 }
0x172a   :  { %v2794_v30 = vpop.f32.mrb[23].mxu1 }
0x1730   :  { %v2269_v31 = vpop.f32.mrb[24].mxu0 }
0x1731   :  { %v2270_v32 = vadd.f32 %v2269_v31, %v2193_v29  ;;  %v2805_v15 = vpop.f32.mrb[25].mxu0 }
0x1733   :  { %v2273_v33 = vadd.f32 %v3197_v50, %v2270_v32  ;;  %v46_v50 = vld [vmem:[%s3485_s3] sm:$0xff] }
0x1735   :  { %3036 = vtanh.f32 %v2273_v33 }
0x173f   :  { %v3037_v34 = vpop.eup %3036 }
0x1740   :  { %v2275_v36 = vmul.f32 %v3037_v34, %v3144_v22  ;;  %v47_v22 = vld [vmem:[%s3485_s3 + $0x8] sm:$0xff] }
0x1741   :  { %v2962_v45 = vpack.c.bf16 %v47_v22, %v46_v50 }
0x1742   :  { %v2276_v37 = vadd.f32 %v2275_v36, %v3146_v24  ;;  %v48_v24 = vld [vmem:[%s3485_s3 + $0x10] sm:$0xff] }
0x1743   :  { %2963 = vmatpush3.bf16.msra.mxu1 %v2962_v45  ;;  %v2965_v47 = vpack.c.bf16 %v49_v46, %v48_v24 }
0x1744   :  { %2279 = vrot.lane.b32.xlu0 %v2276_v37, %s3071_s9  ;;  %v2277_v40 = vmul.f32 %v2276_v37, %v2018_v11  ;;  %2964 = vmatprep.subr.bf16.mxu1 %v3067_v0 }
0x1747   :  { %2966 = vmatpush3.bf16.msra.mxu1 %v2965_v47 }
0x17b6   :  { %v2280_v38 = vpop.permute.xlu0 %2279 }
0x17b7   :  { %v2282_v1 = vmul.f32 %v2280_v38, %v2276_v37 }
0x17b9   :  { %2284 = vrot.lane.b32.xlu1 %v2282_v1, %s3072_s10 }
0x182b   :  { %v2285_v41 = vpop.permute.xlu1 %2284 }
0x182c   :  { %v2287_v44 = vadd.f32 %v2285_v41, %v2277_v40 }
0x182e   :  { %3038 = vtanh.f32 %v2287_v44 }
0x1838   :  { %v3039_v48 = vpop.eup %3038 }
0x1839   :  { %2290 = vrot.lane.b32.xlu0 %v3039_v48, %s3071_s9 }
0x18ab   :  { %v2291_v49 = vpop.permute.xlu0 %2290 }
0x18ac   :  { %v2293_v51 = vmul.f32 %v2291_v49, %v2276_v37 }
0x18ae   :  { %2299 = vrot.lane.b32.xlu1 %v2293_v51, %s3072_s10 }
0x1920   :  { %v2300_v52 = vpop.permute.xlu1 %2299 }
0x1921   :  { %2815 = vmatmul.mubr.msk.f32.vlgmr.msra.gmra.mrb[24].mxu1 %vm150_vm6, %v2300_v52 }
0x19f4   :  { %v2369_v54 = vpop.f32.mrb[24].mxu1 }
0x19f5   :  { %v2370_v55 = vadd.f32 %v2407_v53, %v2369_v54  ;;  %v2816_v5 = vpop.f32.mrb[25].mxu1 }
0x19f7   :  { %2374 = vst.msk [vmem:[%s3486_s4] sm:$0x3] %vm2373_vm7, %v2370_v55 }
0x19f8   :  { %2379 = vsyncpa [#allocation3], 1 }

</bundles_post_ra>
